<compile_context>
chip_gen: v5e
topology: v5e:2x2
jax: 0.10.0
libtpu: 0.0.40
codegen_flags: <defaults>
</compile_context>

<pallas_src>
import functools

import numpy as np
import jax
import jax.numpy as jnp
from jax.experimental import pallas as pl
from jax.experimental.pallas import tpu as pltpu


# ----------------------------- module "init" -------------------------------
def _cheb_setup(N):
    """Standard Chebyshev nodes + barycentric weights, exactly as the module."""
    i = np.linspace(0.0, 1.0, N)
    nodes_std = np.cos(np.pi * i).astype(np.float32)
    w = np.ones(N, dtype=np.float32)
    w[0] *= 0.5
    w[-1] *= 0.5
    w[1::2] = -1.0
    return nodes_std, w.astype(np.float32)


# ------------------------------- Pallas kernel ------------------------------
def _recip(x):
    """EUP approx reciprocal + one Newton step (~f32 accuracy).

    Moves the per-element divide off the vector-ALU slot onto the otherwise
    idle EUP.  Exact zeros produce inf/nan here, but those entries are always
    overwritten by the small-diff selects below (same structure as the torch
    reference), so no NaN escapes.
    """
    r = pl.reciprocal(x, approx=True)
    return r * (2.0 - x * r)


def _interp2d_kernel(x_ref, va_ref, s0_ref, s1_ref, w1_ref, o_ref,
                     *, n1, n1_pad, scale0, off0, scale1, off1, eps):
    # x_ref: (2, TP); va_ref: (n_aug, N0); s0: (N0,1); s1/w1: (N1,1); o: (1, TP)
    x0 = x_ref[0:1, :]                                    # (1, TP)
    x1 = x_ref[1:2, :]                                    # (1, TP)

    # ---- dim 0: barycentric reciprocals along grid axis 0 ----
    t0c = x0 * scale0 + off0                              # fused to-standard map
    dx0 = t0c - s0_ref[...]                               # (N0, TP)
    ad0 = jnp.abs(dx0)
    small0 = ad0 < eps                                    # (N0, TP)
    hit0 = jnp.min(ad0, axis=0, keepdims=True) < eps      # (1, TP) == any(small0)
    r0 = _recip(dx0)
    r0 = jnp.where(hit0, 0.0, r0)
    r0 = jnp.where(small0, 1.0, r0)                       # w0 already folded into va

    # ---- fused MXU contraction: [values.T*w0 ; ... ; w0] @ r0 ----
    # rows 0..n1-1 -> num0 (w0-weighted), row n1_pad -> den0, rest zero padding.
    nd0 = jnp.dot(va_ref[...], r0,
                  preferred_element_type=jnp.float32,
                  precision=jax.lax.Precision.HIGHEST)    # (n_aug, TP)
    num0 = nd0[:n1, :]                                    # (N1, TP)
    den0 = nd0[n1_pad:n1_pad + 1, :]                      # (1, TP), 8-aligned row

    # ---- dim 1: barycentric weights along grid axis 1 ----
    t1c = x1 * scale1 + off1                              # (1, TP)
    dx1 = t1c - s1_ref[...]                               # (N1, TP)
    ad1 = jnp.abs(dx1)
    small1 = ad1 < eps
    hit1 = jnp.min(ad1, axis=0, keepdims=True) < eps
    r1 = _recip(dx1)
    r1 = jnp.where(hit1, 0.0, r1)
    r1 = jnp.where(small1, 1.0, r1)
    t1 = r1 * w1_ref[...]                                 # (N1, TP)

    num1 = jnp.sum(t1 * num0, axis=0, keepdims=True)      # (1, TP)
    den1 = jnp.sum(t1, axis=0, keepdims=True)             # (1, TP)

    # Deferred den0 division + EUP reciprocal for the final divide:
    # num1/(den0*den1) == sum(t1*(num0/den0))/den1
    o_ref[...] = num1 * _recip(den0 * den1)               # lane-dense store


def make_spectral_interpolator_2d(values, nodes_std, cheb_w, domains,
                                  *, tile_p=None, eps=1e-14):
    """Build a jitted Pallas interpolator for a fixed `values` grid.

    The values-invariant prep (w0-folded values.T, den row, node columns) is
    done once here on the host; the returned function only pads/transposes
    x_eval and calls the kernel, all under one jit.
    """
    values_np = np.asarray(values, dtype=np.float32)
    n0, n1 = values_np.shape
    s0_np = np.asarray(nodes_std[0], np.float32).reshape(n0, 1)
    s1_np = np.asarray(nodes_std[1], np.float32).reshape(n1, 1)
    w0_np = np.asarray(cheb_w[0], np.float32).reshape(n0)
    w1_np = np.asarray(cheb_w[1], np.float32).reshape(n1, 1)

    # values.T with w0 folded into every row, plus a w0 row (produces den0 from
    # the same matmul) on an 8-sublane-aligned index, zero-padded to a multiple
    # of 8 rows.
    n1_pad = ((n1 + 7) // 8) * 8
    n_aug = n1_pad + 8
    vals_aug_np = np.zeros((n_aug, n0), np.float32)
    vals_aug_np[:n1, :] = values_np.T * w0_np[None, :]
    vals_aug_np[n1_pad, :] = w0_np

    (a0, b0), (a1, b1) = [(float(d[0]), float(d[1])) for d in domains]
    scale0 = 2.0 / (b0 - a0)
    off0 = -2.0 * a0 / (b0 - a0) - 1.0
    scale1 = 2.0 / (b1 - a1)
    off1 = -2.0 * a1 / (b1 - a1) - 1.0

    kernel = functools.partial(
        _interp2d_kernel,
        n1=int(n1), n1_pad=int(n1_pad),
        scale0=scale0, off0=off0, scale1=scale1, off1=off1,
        eps=float(eps),
    )

    vals_aug = jnp.asarray(vals_aug_np)
    s0 = jnp.asarray(s0_np)
    s1 = jnp.asarray(s1_np)
    w1 = jnp.asarray(w1_np)

    @jax.jit
    def interpolate(x_eval):
        batch_shape = x_eval.shape[:-1]
        P = int(np.prod(batch_shape)) if batch_shape else 1

        # Auto tile: at most 2 grid steps (keeps both v7x TensorCores busy via
        # the "parallel" grid axis; on single-TC v6e/v5e the extra step costs
        # only ~0.35 us), lane width a multiple of 128.
        if tile_p is None:
            half = -(-P // 2)
            tp = max(128, ((half + 127) // 128) * 128)
        else:
            tp = int(tile_p)
        P_pad = -(-P // tp) * tp

        x_flat = x_eval.reshape(P, 2).astype(jnp.float32)
        if P_pad != P:
            x_flat = jnp.pad(x_flat, ((0, P_pad - P), (0, 0)), mode="edge")
        xT = x_flat.T                                      # (2, P_pad): P on lanes

        out = pl.pallas_call(
            kernel,
            out_shape=jax.ShapeDtypeStruct((1, P_pad), jnp.float32),
            grid=(P_pad // tp,),
            in_specs=[
                pl.BlockSpec((2, tp), lambda i: (0, i)),       # eval pts (P on lanes)
                pl.BlockSpec((n_aug, n0), lambda i: (0, 0)),   # [values.T*w0 ; w0]
                pl.BlockSpec((n0, 1), lambda i: (0, 0)),       # nodes dim0 (column)
                pl.BlockSpec((n1, 1), lambda i: (0, 0)),       # nodes dim1
                pl.BlockSpec((n1, 1), lambda i: (0, 0)),       # weights dim1
            ],
            out_specs=pl.BlockSpec((1, tp), lambda i: (0, i)),  # lane-dense out
            compiler_params=pltpu.CompilerParams(
                dimension_semantics=("parallel",)),
        )(xT, vals_aug, s0, s1, w1)

        # torch forward returns shape (values_batch_prod=1, prod(x_eval batch))
        return out[:, :P]

    return interpolate


# ------------------------------ pure-JAX reference --------------------------
def ref_forward(x_eval, values, nodes_std, cheb_w, domains, eps=1e-14):
    P = int(np.prod(x_eval.shape[:-1]))
    x = x_eval.reshape(P, 2).astype(jnp.float32)
    (a0, b0), (a1, b1) = domains

    def stage(coord, a, L, s, w, vals_contract):
        t = 2.0 * (coord - a) / L - 1.0
        dx = t[:, None] - s[None, :]
        small = jnp.abs(dx) < eps
        hit = jnp.any(small, axis=-1, keepdims=True)
        r = jnp.where(hit, 0.0, 1.0 / dx)
        r = jnp.where(small, 1.0, r)
        tw = r * w[None, :]
        num = vals_contract(tw)
        den = jnp.sum(tw, axis=-1, keepdims=True)
        return num / den

    g = stage(x[:, 0], a0, b0 - a0, nodes_std[0], cheb_w[0],
              lambda tw: jnp.dot(tw, values,
                                 precision=jax.lax.Precision.HIGHEST))
    out = stage(x[:, 1], a1, b1 - a1, nodes_std[1], cheb_w[1],
                lambda tw: jnp.sum(tw * g, axis=-1, keepdims=True))
    return out[:, 0].reshape(1, P)


def _exact_roundtrip_node(nodes_np, a, L):
    """Find a node whose physical coordinate maps back to the standard node
    bit-exactly in float32 (to exercise the small_diff branch)."""
    a32, L32 = np.float32(a), np.float32(L)
    for idx in range(len(nodes_np)):
        s = np.float32(nodes_np[idx])
        x = a32 + (s + np.float32(1.0)) * L32 / np.float32(2.0)
        t = np.float32(2.0) * (x - a32) / L32 - np.float32(1.0)
        if t == s:
            return float(x)
    return None


# ----------------------------------- main -----------------------------------
if __name__ == "__main__":
    Ns = [32, 16]
    bases = ["chebyshev", "chebyshev"]
    domains = [(0.0, 1.0), (-1.0, 1.0)]

    s0_np, w0_np = _cheb_setup(Ns[0])
    s1_np, w1_np = _cheb_setup(Ns[1])
    nodes_std = [jnp.asarray(s0_np), jnp.asarray(s1_np)]
    cheb_w = [jnp.asarray(w0_np), jnp.asarray(w1_np)]

    key = jax.random.PRNGKey(0)
    kv, kx = jax.random.split(key)
    # The module initializes `values` (nn.Parameter of shape Ns) to zeros;
    # use deterministic random values here so the test is non-trivial.
    values = jax.random.normal(kv, tuple(Ns), dtype=jnp.float32)

    # P chosen so the padded grid has exactly 2 steps at the auto tile of 1024
    # (one per v7x TensorCore) and exercises the padding path (2000 -> 2048).
    P = 2000
    u = jax.random.uniform(kx, (P, 2), dtype=jnp.float32)
    x_eval = jnp.stack(
        [
            domains[0][0] + u[:, 0] * (domains[0][1] - domains[0][0]),
            domains[1][0] + u[:, 1] * (domains[1][1] - domains[1][0]),
        ],
        axis=-1,
    )
    # Put one eval point exactly on a grid node (bit-exact round-trip) to
    # exercise the small-diff branch of the barycentric formula.
    x0_exact = _exact_roundtrip_node(s0_np, domains[0][0],
                                     domains[0][1] - domains[0][0])
    x1_exact = _exact_roundtrip_node(s1_np, domains[1][0],
                                     domains[1][1] - domains[1][0])
    if x0_exact is not None and x1_exact is not None:
        x_eval = x_eval.at[0].set(jnp.array([x0_exact, x1_exact],
                                            dtype=jnp.float32))

    interpolate = make_spectral_interpolator_2d(values, nodes_std, cheb_w,
                                                domains)
    out = interpolate(x_eval)
    out = jax.block_until_ready(out)

    ref = ref_forward(x_eval, values, nodes_std, cheb_w, domains)
    assert out.shape == (1, P), out.shape
    np.testing.assert_allclose(np.asarray(out), np.asarray(ref),
                               rtol=5e-3, atol=5e-3)
    print("KERNEL_OK")
</pallas_src>

<mosaic_0001>
module attributes {stable_mosaic.version = 11 : i64} {
  func.func @_interp2d_kernel(%arg0: i32, %arg1: memref<2x1024xf32, #tpu.memory_space<vmem>>, %arg2: memref<24x32xf32, #tpu.memory_space<vmem>>, %arg3: memref<32x1xf32, #tpu.memory_space<vmem>>, %arg4: memref<16x1xf32, #tpu.memory_space<vmem>>, %arg5: memref<16x1xf32, #tpu.memory_space<vmem>>, %arg6: memref<1x1024xf32, #tpu.memory_space<vmem>>) attributes {dimension_semantics = [#tpu.dimension_semantics<parallel>], iteration_bounds = array<i64: 2>, scalar_prefetch = 0 : i64, scratch_operands = 0 : i64, tpu.core_type = #tpu.core_type<tc>, window_params = [{transform_indices = @transform_0, window_bounds = array<i64: 2, 1024>}, {pipeline_mode = #tpu.pipeline_mode<synchronous>, transform_indices = @transform_1, window_bounds = array<i64: 24, 32>}, {pipeline_mode = #tpu.pipeline_mode<synchronous>, transform_indices = @transform_2, window_bounds = array<i64: 32, 1>}, {pipeline_mode = #tpu.pipeline_mode<synchronous>, transform_indices = @transform_3, window_bounds = array<i64: 16, 1>}, {pipeline_mode = #tpu.pipeline_mode<synchronous>, transform_indices = @transform_4, window_bounds = array<i64: 16, 1>}, {transform_indices = @transform_5, window_bounds = array<i64: 1, 1024>}]} {
    %c0 = arith.constant 0 : index
    %c0_0 = arith.constant 0 : index
    %0 = vector.load %arg1[%c0, %c0_0] : memref<2x1024xf32, #tpu.memory_space<vmem>>, vector<1x1024xf32>
    %c1 = arith.constant 1 : index
    %c0_1 = arith.constant 0 : index
    %1 = vector.load %arg1[%c1, %c0_1] : memref<2x1024xf32, #tpu.memory_space<vmem>>, vector<1x1024xf32>
    %cst = arith.constant 2.000000e+00 : f32
    %2 = vector.broadcast %cst : f32 to vector<1x1024xf32>
    %3 = arith.mulf %0, %2 : vector<1x1024xf32>
    %cst_2 = arith.constant -1.000000e+00 : f32
    %4 = vector.broadcast %cst_2 : f32 to vector<1x1024xf32>
    %5 = arith.addf %3, %4 : vector<1x1024xf32>
    %c0_3 = arith.constant 0 : index
    %c0_4 = arith.constant 0 : index
    %6 = vector.load %arg3[%c0_3, %c0_4] : memref<32x1xf32, #tpu.memory_space<vmem>>, vector<32x1xf32>
    %7 = vector.broadcast %5 : vector<1x1024xf32> to vector<32x1024xf32>
    %8 = vector.broadcast %6 : vector<32x1xf32> to vector<32x1024xf32>
    %9 = arith.subf %7, %8 : vector<32x1024xf32>
    %10 = math.absf %9 : vector<32x1024xf32>
    %cst_5 = arith.constant 9.99999982E-15 : f32
    %11 = vector.broadcast %cst_5 : f32 to vector<32x1024xf32>
    %12 = arith.cmpf olt, %10, %11 : vector<32x1024xf32>
    %cst_6 = arith.constant dense<0x7F800000> : vector<1024xf32>
    %13 = vector.multi_reduction <minimumf>, %10, %cst_6 [0] : vector<32x1024xf32> to vector<1024xf32>
    %14 = vector.shape_cast %13 : vector<1024xf32> to vector<1x1024xf32>
    %cst_7 = arith.constant 9.99999982E-15 : f32
    %15 = vector.broadcast %cst_7 : f32 to vector<1x1024xf32>
    %16 = arith.cmpf olt, %14, %15 : vector<1x1024xf32>
    %17 = tpu.reciprocal %9 {approx = true} : vector<32x1024xf32> -> vector<32x1024xf32>
    %18 = arith.mulf %9, %17 : vector<32x1024xf32>
    %cst_8 = arith.constant 2.000000e+00 : f32
    %19 = vector.broadcast %cst_8 : f32 to vector<32x1024xf32>
    %20 = arith.subf %19, %18 : vector<32x1024xf32>
    %21 = arith.mulf %17, %20 : vector<32x1024xf32>
    %cst_9 = arith.constant 0.000000e+00 : f32
    %22 = vector.shape_cast %16 : vector<1x1024xi1> to vector<1x1024xi1>
    %23 = vector.broadcast %22 : vector<1x1024xi1> to vector<32x1024xi1>
    %24 = vector.broadcast %cst_9 : f32 to vector<32x1024xf32>
    %25 = arith.select %23, %24, %21 : vector<32x1024xi1>, vector<32x1024xf32>
    %cst_10 = arith.constant 1.000000e+00 : f32
    %26 = vector.broadcast %cst_10 : f32 to vector<32x1024xf32>
    %27 = arith.select %12, %26, %25 : vector<32x1024xi1>, vector<32x1024xf32>
    %c0_11 = arith.constant 0 : index
    %c0_12 = arith.constant 0 : index
    %28 = vector.load %arg2[%c0_11, %c0_12] : memref<24x32xf32, #tpu.memory_space<vmem>>, vector<24x32xf32>
    %cst_13 = arith.constant dense<0.000000e+00> : vector<24x1024xf32>
    %29 = tpu.matmul %28, %27, %cst_13 {dimension_numbers = #tpu.dot_dimension_numbers<[1], [0], [0], [1], [0, 0, 1, 1], [], []>, precision = #tpu.contract_precision<fp32>} : vector<24x32xf32>, vector<32x1024xf32>, vector<24x1024xf32> -> vector<24x1024xf32>
    %30 = vector.extract_strided_slice %29 {offsets = [0, 0], sizes = [16, 1024], strides = [1, 1]} : vector<24x1024xf32> to vector<16x1024xf32>
    %31 = vector.extract_strided_slice %29 {offsets = [16, 0], sizes = [1, 1024], strides = [1, 1]} : vector<24x1024xf32> to vector<1x1024xf32>
    %cst_14 = arith.constant 1.000000e+00 : f32
    %32 = vector.broadcast %cst_14 : f32 to vector<1x1024xf32>
    %33 = arith.mulf %1, %32 : vector<1x1024xf32>
    %cst_15 = arith.constant 0.000000e+00 : f32
    %34 = vector.broadcast %cst_15 : f32 to vector<1x1024xf32>
    %35 = arith.addf %33, %34 : vector<1x1024xf32>
    %c0_16 = arith.constant 0 : index
    %c0_17 = arith.constant 0 : index
    %36 = vector.load %arg4[%c0_16, %c0_17] : memref<16x1xf32, #tpu.memory_space<vmem>>, vector<16x1xf32>
    %37 = vector.broadcast %35 : vector<1x1024xf32> to vector<16x1024xf32>
    %38 = vector.broadcast %36 : vector<16x1xf32> to vector<16x1024xf32>
    %39 = arith.subf %37, %38 : vector<16x1024xf32>
    %40 = math.absf %39 : vector<16x1024xf32>
    %cst_18 = arith.constant 9.99999982E-15 : f32
    %41 = vector.broadcast %cst_18 : f32 to vector<16x1024xf32>
    %42 = arith.cmpf olt, %40, %41 : vector<16x1024xf32>
    %cst_19 = arith.constant dense<0x7F800000> : vector<1024xf32>
    %43 = vector.multi_reduction <minimumf>, %40, %cst_19 [0] : vector<16x1024xf32> to vector<1024xf32>
    %44 = vector.shape_cast %43 : vector<1024xf32> to vector<1x1024xf32>
    %cst_20 = arith.constant 9.99999982E-15 : f32
    %45 = vector.broadcast %cst_20 : f32 to vector<1x1024xf32>
    %46 = arith.cmpf olt, %44, %45 : vector<1x1024xf32>
    %47 = tpu.reciprocal %39 {approx = true} : vector<16x1024xf32> -> vector<16x1024xf32>
    %48 = arith.mulf %39, %47 : vector<16x1024xf32>
    %cst_21 = arith.constant 2.000000e+00 : f32
    %49 = vector.broadcast %cst_21 : f32 to vector<16x1024xf32>
    %50 = arith.subf %49, %48 : vector<16x1024xf32>
    %51 = arith.mulf %47, %50 : vector<16x1024xf32>
    %cst_22 = arith.constant 0.000000e+00 : f32
    %52 = vector.shape_cast %46 : vector<1x1024xi1> to vector<1x1024xi1>
    %53 = vector.broadcast %52 : vector<1x1024xi1> to vector<16x1024xi1>
    %54 = vector.broadcast %cst_22 : f32 to vector<16x1024xf32>
    %55 = arith.select %53, %54, %51 : vector<16x1024xi1>, vector<16x1024xf32>
    %cst_23 = arith.constant 1.000000e+00 : f32
    %56 = vector.broadcast %cst_23 : f32 to vector<16x1024xf32>
    %57 = arith.select %42, %56, %55 : vector<16x1024xi1>, vector<16x1024xf32>
    %c0_24 = arith.constant 0 : index
    %c0_25 = arith.constant 0 : index
    %58 = vector.load %arg5[%c0_24, %c0_25] : memref<16x1xf32, #tpu.memory_space<vmem>>, vector<16x1xf32>
    %59 = vector.broadcast %58 : vector<16x1xf32> to vector<16x1024xf32>
    %60 = arith.mulf %57, %59 : vector<16x1024xf32>
    %61 = arith.mulf %60, %30 : vector<16x1024xf32>
    %cst_26 = arith.constant dense<0.000000e+00> : vector<1024xf32>
    %62 = vector.multi_reduction <add>, %61, %cst_26 [0] : vector<16x1024xf32> to vector<1024xf32>
    %63 = vector.shape_cast %62 : vector<1024xf32> to vector<1x1024xf32>
    %cst_27 = arith.constant dense<0.000000e+00> : vector<1024xf32>
    %64 = vector.multi_reduction <add>, %60, %cst_27 [0] : vector<16x1024xf32> to vector<1024xf32>
    %65 = vector.shape_cast %64 : vector<1024xf32> to vector<1x1024xf32>
    %66 = arith.mulf %31, %65 : vector<1x1024xf32>
    %67 = tpu.reciprocal %66 {approx = true} : vector<1x1024xf32> -> vector<1x1024xf32>
    %68 = arith.mulf %66, %67 : vector<1x1024xf32>
    %cst_28 = arith.constant 2.000000e+00 : f32
    %69 = vector.broadcast %cst_28 : f32 to vector<1x1024xf32>
    %70 = arith.subf %69, %68 : vector<1x1024xf32>
    %71 = arith.mulf %67, %70 : vector<1x1024xf32>
    %72 = arith.mulf %63, %71 : vector<1x1024xf32>
    %c0_29 = arith.constant 0 : index
    %c0_30 = arith.constant 0 : index
    %73 = vector.load %arg6[%c0_29, %c0_30] : memref<1x1024xf32, #tpu.memory_space<vmem>>, vector<1x1024xf32>
    tpu.vector_store %arg6[%c0_29, %c0_30], %72 {strides = array<i32>} : memref<1x1024xf32, #tpu.memory_space<vmem>>, vector<1x1024xf32>,
    return
  }
  func.func @transform_0(%arg0: i32) -> (i32, i32) {
    %c0_i32 = arith.constant 0 : i32
    %c0_i32_0 = arith.constant 0 : i32
    return %c0_i32, %arg0 : i32, i32
  }
  func.func @transform_1(%arg0: i32) -> (i32, i32) {
    %c0_i32 = arith.constant 0 : i32
    %c0_i32_0 = arith.constant 0 : i32
    %c0_i32_1 = arith.constant 0 : i32
    return %c0_i32, %c0_i32_0 : i32, i32
  }
  func.func @transform_2(%arg0: i32) -> (i32, i32) {
    %c0_i32 = arith.constant 0 : i32
    %c0_i32_0 = arith.constant 0 : i32
    %c0_i32_1 = arith.constant 0 : i32
    return %c0_i32, %c0_i32_0 : i32, i32
  }
  func.func @transform_3(%arg0: i32) -> (i32, i32) {
    %c0_i32 = arith.constant 0 : i32
    %c0_i32_0 = arith.constant 0 : i32
    %c0_i32_1 = arith.constant 0 : i32
    return %c0_i32, %c0_i32_0 : i32, i32
  }
  func.func @transform_4(%arg0: i32) -> (i32, i32) {
    %c0_i32 = arith.constant 0 : i32
    %c0_i32_0 = arith.constant 0 : i32
    %c0_i32_1 = arith.constant 0 : i32
    return %c0_i32, %c0_i32_0 : i32, i32
  }
  func.func @transform_5(%arg0: i32) -> (i32, i32) {
    %c0_i32 = arith.constant 0 : i32
    %c0_i32_0 = arith.constant 0 : i32
    return %c0_i32, %arg0 : i32, i32
  }
}

</mosaic_0001>

<bundles_post_ra>
// kernel: interpolate.1
= control target key start
LH: loop header
LB: loop body
LE: loop exit
PB: predicated region body
PF: predicated region fallthrough
CT: control target
= control target key end

     0   :  { %10 = vsyncpa [#allocation3], 0  ;;  %s5208_s0 = inlined_call_operand.vmem [shape: f32[2,2048], index: 0, kind: input, shape index: {}]   ;;  %s5209_s1 = inlined_call_operand.vmem [shape: f32[24,32], index: 1, kind: input, shape index: {}]   ;;  %s5210_s2 = inlined_call_operand.vmem [shape: f32[32,1], index: 2, kind: input, shape index: {}]   ;;  %s5211_s3 = inlined_call_operand.hbm [shape: f32[16,1], index: 3, kind: input, shape index: {}]   ;;  %s5212_s4 = inlined_call_operand.vmem [shape: f32[16,1], index: 4, kind: input, shape index: {}]   ;;  %s5213_s5 = inlined_call_operand.hbm [shape: f32[1,2048], index: 5, kind: output, shape index: {}]  }
   0x1   :  { %11 = vsyncpa [#allocation4], 0 }
   0x2   :  { %13 = vsyncpa [#allocation4 + $0x1], 0  ;;  %s3553_s18 = smov 0   ;;  %s3555_s19 = smov 0  }
   0x3   :  { %s3557_s20 = smov 0   ;;  %s3559_s21 = smov 0  }
   0x4 LB: > { %s3574_s22 = sadd.s32 4294967295, %s3517_s21   ;;  %s3238_s23 = sadd.s32 4294967294, %s3517_s21   ;;  %s3517_s21 = sphi %s3559_s21, %s5346_s21   ;;  %s3513_s20 = sphi %s3557_s20, %s5345_s20   ;;  %s3509_s19 = sphi %s3555_s19, %s5344_s19   ;;  %s3505_s18 = sphi %s3553_s18, %s5343_s18  }
   0x5   : > { %s3578_s24 = sadd.s32 1, %s3517_s21   ;;  %s136_s25 = sadd.s32 1, %s3513_s20 }
   0x6   : > { %s133_s26 = ssub.s32 %s3517_s21, %s3578_s24  ;;  %p146_p0 = scmp.ne.s32.totalorder %s3513_s20, %s3509_s19 }
   0x7   : > { %p134_p1 = scmp.eq.s32.totalorder %s133_s26, 0  ;;  %p147_p2 = scmp.eq.s32.totalorder %s3574_s22, 1 }
   0x8   : > { %p152_p3 = scmp.ne.s32.totalorder %s3509_s19, %s3505_s18  ;;  %p153_p4 = scmp.eq.s32.totalorder %s3238_s23, 1 }
   0x9   : > { %s3589_s27 = scalar_select %p134_p1, %s3513_s20, %s136_s25  }
   0xa   : > { %p3591_p5 = por %p147_p2, %p146_p0  ;;  %p3595_p6 = por %p153_p4, %p152_p3 }
   0xb   : > { %p3239_p7 = scmp.ge.s32.totalorder %s3517_s21, 1  ;;  %p160_p8 = scmp.lt.s32.totalorder %s3517_s21, 3 }
   0xc   : > { %p3266_p9 = scmp.eq.s32.totalorder %s3574_s22, 0  ;;  %s177_s7 = sshll.u32 %s5211_s3, 4  ;;  %s178_s7 = int_to_ptr.hbm [resolvable:$true] %s177_s7 }
   0xd   : > { %p161_p10 = pnand %p3239_p7, %p160_p8  ;;  %s3519_s8 = smov [#allocation2]  }
   0xe   : > { %s179_s9 = sshll.u32 %s3519_s8, 4  ;;  %s3520_s10 = smov 128   ;;  %s180_s9 = int_to_ptr.vmem [resolvable:$true] %s179_s9 }
   0xf   : > { %p3258_p11 = pneg %p161_p10  ;;  %s3521_s11 = smov 8  }
  0x10   : > { %207 = sbr.rel (%p161_p10) target bundleno = 641 (0x281), region = 40 }
  0x11   : > { %p3259_p12 = pnand %p3266_p9, %p3258_p11 }
  0x13   : > { %3261 = dma.hbm_to_vmem [thread:$0]  (!%p3259_p12), %s178_s7, 256, %s180_s9, [#allocation3], %s3520_s10, %s3520_s10, %s3521_s11  }
  0x15   : > { %3496 = dma.done.wait (%p3266_p9), [#allocation3], 256  }
  0x16   : > { %3498 = vsyncadd (%p3266_p9), [#allocation3], 4294967040  ;;  %v3522_v0 = vmov 0   ;;  %v250_v1 = vld [vmem:[%s5210_s2 + $0x10] sm:$0xff]  ;;  %v248_v2 = vld [vmem:[%s5210_s2] sm:$0xff]  ;;  %s3630_s8 = sshll.u32 %s3574_s22, 3 }
  0x17   : > { %3306 = vset.pattern.permute.xlu1 %v3522_v0  ;;  %3305 = vset.pattern.permute.xlu0 %v3522_v0  ;;  %v2663_v3 = vld [vmem:[#allocation2] sm:$0xff]  ;;  %v251_v4 = vld [vmem:[%s5210_s2 + $0x18] sm:$0xff]  ;;  %v249_v5 = vld [vmem:[%s5210_s2 + $0x8] sm:$0xff]  ;;  %p237_p13 = scmp.lt.s32.totalorder %s3630_s8, 15  ;;  %vm676_vm0 = vcmask 261120   ;;  %s233_s25 = sand.u32 1, %s3509_s19  }
  0x18   : > { %3307 = vset.pattern.permute.xlu2 %v3522_v0  ;;  %281 = vperm.xlu1 %3306, %v250_v1   ;;  %v2664_v6 = vld [vmem:[#allocation2 + $0x8] sm:$0xff]  ;;  %v2916_v8 = vld [vmem:[%s5212_s4] sm:$0xff]  ;;  %s3244_s26 = sshll.u32 %s233_s25, 3  ;;  %s3162_s7 = scalar_lea.hbm %s5213_s5, %s3630_s8 }
  0x19   : > { %271 = vperm.xlu0 %3305, %v248_v2   ;;  %2684 = vperm.xlu2 %3307, %v2663_v3   ;;  %v2917_v7 = vld [vmem:[%s5212_s4 + $0x8] sm:$0xff]  ;;  %s238_s9 = scalar_select %p237_p13, %s3630_s8, 15  ;;  %v673_v30 = vld [vmem:[%s5209_s1] sm:$0xff] }
  0x1a   : > { %v678_v33 = vsel %vm676_vm0, %v673_v30, 0  ;;  %s3166_s11 = sshll.u32 %s3162_s7, 4  ;;  %s3152_s12 = scalar_lea.sflag [#allocation4], %s233_s25  ;;  %s3167_s11 = int_to_ptr.hbm [resolvable:$true] %s3166_s11 }
  0x1b   : > { %s3246_s10 = sshll.u32 %s238_s9, 1  ;;  %v3698_v41 = vand.u32 4294901760, %v678_v33  ;;  %s235_s9 = scalar_lea.vmem [#allocation5], %s3244_s26 }
  0x1c   : > { %s3637_s13 = scalar_lea.vmem %s5208_s0, %s3246_s10  ;;  %s3164_s10 = sshll.u32 %s235_s9, 4  ;;  %s3165_s10 = int_to_ptr.vmem [resolvable:$true] %s3164_s10 }
  0x1d   : > { %v243_v9 = vld [vmem:[%s3637_s13] ss:$2 sm:$0xff]  ;;  %v3727_v55 = vsub.f32 %v678_v33, %v3698_v41  ;;  %s3471_s15 = scalar_lea.hbm %s5213_s5, 16 }
  0x1e   : > { %v246_v10 = vmul.f32 2.0, %v243_v9 }
  0x20   : > { %286 = vperm.xlu1 %3306, %v251_v4   ;;  %v247_v11 = vadd.f32 -1.0, %v246_v10 }
  0x21   : > { %276 = vperm.xlu0 %3305, %v249_v5   ;;  %2689 = vperm.xlu2 %3307, %v2664_v6  }
  0x22   : > { %v3640_v12 = vperm.slane %v247_v11, 4  ;;  %v3642_v13 = vperm.slane %v247_v11, 5  ;;  %v3644_v14 = vperm.slane %v247_v11, 6  ;;  %v3646_v15 = vperm.slane %v247_v11, 7 }
  0x23   : > { %v253_v16 = vperm.slane %v247_v11, 0  ;;  %v254_v19 = vperm.slane %v247_v11, 1  ;;  %v3688_v36 = vperm.slane %v247_v11, 2  ;;  %v256_v37 = vperm.slane %v247_v11, 3 }
  0x24   : > { %5247 = vst [vmem:[#allocation8_spill] sm:$0xff] %v3644_v14 }
  0x25   : > { %5248 = vst [vmem:[#allocation9_spill] sm:$0xff] %v3646_v15 }
  0x28   : > { %2925 = vperm.xlu1 %3306, %v2917_v7   ;;  %v3754_v7 = vand.u32 4294901760, %v3727_v55 }
  0x29   : > { %2920 = vperm.xlu0 %3305, %v2916_v8  }
  0x8a   : > { %v282_v17 = vpop.permute.xlu1 %281 }
  0x8b   : > { %v272_v18 = vpop.permute.xlu0 %271  ;;  %v3649_v20 = vsub.f32 %v3640_v12, %v282_v17  ;;  %v3652_v21 = vsub.f32 %v3642_v13, %v282_v17  ;;  %v3655_v22 = vsub.f32 %v3644_v14, %v282_v17  ;;  %v3658_v23 = vsub.f32 %v3646_v15, %v282_v17 }
  0x8c   : > { %v3660_v24 = vsub.f32 %v253_v16, %v282_v17  ;;  %v3662_v25 = vsub.f32 %v253_v16, %v272_v18  ;;  %v3665_v26 = vsub.f32 %v3640_v12, %v272_v18  ;;  %v3668_v27 = vsub.f32 %v3642_v13, %v272_v18 }
  0x8d   : > { %5249 = vst [vmem:[#allocation10_spill] sm:$0xff] %v3652_v21  ;;  %v3671_v28 = vsub.f32 %v3644_v14, %v272_v18  ;;  %v3674_v29 = vsub.f32 %v3646_v15, %v272_v18  ;;  %v3679_v31 = vsub.f32 %v254_v19, %v282_v17  ;;  %v3681_v32 = vsub.f32 %v254_v19, %v272_v18 }
  0x8e   : > { %5250 = vst [vmem:[#allocation11_spill] sm:$0xff] %v3655_v22  ;;  %3308 = vrcp.f32 %v3660_v24  ;;  %v321_v46 = vand.u32 2147483647, %v3662_v25  ;;  %v3719_v50 = vsub.f32 %v3688_v36, %v282_v17  ;;  %v3721_v51 = vsub.f32 %v256_v37, %v282_v17 }
  0x8f   : > { %5251 = vst [vmem:[#allocation12_spill] sm:$0xff] %v3658_v23  ;;  %3310 = vrcp.f32 %v3662_v25  ;;  %v337_v52 = vand.u32 2147483647, %v3660_v24  ;;  %v5214_v57 = vand.u32 2147483647, %v3681_v32  ;;  %v3737_v60 = vsub.f32 %v3688_v36, %v272_v18 }
  0x90   : > { %5252 = vst [vmem:[#allocation13_spill] sm:$0xff] %v3671_v28  ;;  %3312 = vrcp.f32 %v3679_v31  ;;  %v3739_v61 = vsub.f32 %v256_v37, %v272_v18  ;;  %v5216_v1 = vand.u32 2147483647, %v3679_v31  ;;  %vm3795_vm4 = vcmp.lt.f32.partialorder %v321_v46, 1e-14 }
  0x91   : > { %5253 = vst [vmem:[#allocation14_spill] sm:$0xff] %v3674_v29  ;;  %3314 = vrcp.f32 %v3681_v32  ;;  %vm3787_vm2 = vcmp.lt.f32.partialorder %v337_v52, 1e-14 }
  0x92   : > { %v3685_v34 = vpop.permute.xlu1 %286 }
  0x93   : > { %v277_v35 = vpop.permute.xlu0 %276  ;;  %v313_v45 = vsub.f32 %v253_v16, %v3685_v34  ;;  %v3730_v56 = vsub.f32 %v254_v19, %v3685_v34 }
  0x94   : > { %v3690_v38 = vsub.f32 %v253_v16, %v277_v35  ;;  %v3693_v39 = vsub.f32 %v254_v19, %v277_v35  ;;  %v3696_v40 = vsub.f32 %v3640_v12, %v277_v35  ;;  %v3702_v42 = vsub.f32 %v3642_v13, %v277_v35  ;;  %v3714_v48 = vpop.eup %3308 }
  0x95   : > { %v3705_v43 = vsub.f32 %v3644_v14, %v277_v35  ;;  %v3708_v44 = vsub.f32 %v3646_v15, %v277_v35  ;;  %v3716_v49 = vpop.eup %3310  ;;  %v345_v62 = vand.u32 2147483647, %v313_v45  ;;  %v3741_v0 = vsub.f32 %v256_v37, %v277_v35 }
  0x96   : > { %v329_v47 = vand.u32 2147483647, %v3690_v38  ;;  %3316 = vrcp.f32 %v3690_v38  ;;  %v3724_v54 = vpop.eup %3312  ;;  %v5215_v58 = vand.u32 2147483647, %v3693_v39  ;;  %v513_v5 = vmul.f32 %v3714_v48, %v3660_v24 }
  0x97   : > { %5254 = vst [vmem:[#allocation15_spill] sm:$0xff] %v3705_v43  ;;  %3318 = vrcp.f32 %v313_v45  ;;  %v3734_v59 = vpop.eup %3314  ;;  %v497_v6 = vmul.f32 %v3716_v49, %v3662_v25  ;;  %v346_v10 = vand.u32 2147483647, %v3730_v56  ;;  %v514_v16 = vmul.f32 %v3724_v54, %v3679_v31 }
  0x98   : > { %5255 = vst [vmem:[#allocation16_spill] sm:$0xff] %v3708_v44  ;;  %v385_v53 = vmin.f32 %v321_v46, %v329_v47  ;;  %v394_v2 = vmin.f32 %v5214_v57, %v5215_v58  ;;  %3320 = vrcp.f32 %v3730_v56  ;;  %v3765_v24 = vsub.f32 %v256_v37, %v3685_v34 }
  0x99   : > { %3322 = vrcp.f32 %v3693_v39  ;;  %v3768_v25 = vsub.f32 %v3688_v36, %v277_v35  ;;  %v546_v37 = vsub.f32 2.0, %v514_v16  ;;  %v674_v35 = vld [vmem:[%s5209_s1 + $0x8] sm:$0xff]  ;;  %vm3783_vm1 = vcmp.lt.f32.partialorder %v345_v62, 1e-14 }
  0x9a   : > { %v386_v63 = vmin.f32 %v385_v53, %v337_v52  ;;  %v395_v11 = vmin.f32 %v394_v2, %v5216_v1  ;;  %v545_v53 = vsub.f32 2.0, %v513_v5  ;;  %v498_v2 = vmul.f32 %v3734_v59, %v3681_v32 }
  0x9b   : > { %v3781_v5 = vsub.f32 %v3688_v36, %v3685_v34  ;;  %vm3791_vm3 = vcmp.lt.f32.partialorder %v329_v47, 1e-14  ;;  %v681_v36 = vsel %vm676_vm0, %v674_v35, 0  ;;  %v339_v47 = vand.u32 2147483647, %v3719_v50 }
  0x9c   : > { %v3317_v3 = vpop.eup %3316  ;;  %v387_v4 = vmin.f32 %v386_v63, %v345_v62  ;;  %v396_v33 = vmin.f32 %v395_v11, %v346_v10  ;;  %v529_v63 = vsub.f32 2.0, %v497_v6  ;;  %v5226_v62 = vand.u32 2147483647, %v3737_v60 }
  0x9d   : > { %v3319_v8 = vpop.eup %3318  ;;  %v505_v9 = vmul.f32 %v3317_v3, %v3690_v38  ;;  %v530_v15 = vsub.f32 2.0, %v498_v2  ;;  %v3804_v46 = vand.u32 4294901760, %v681_v36  ;;  %v577_v35 = vmul.f32 %v3714_v48, %v545_v53 }
  0x9e   : > { %v388_v18 = vrot.slane %v387_v4, 4  ;;  %v521_v19 = vmul.f32 %v3319_v8, %v313_v45  ;;  %v3321_v17 = vpop.eup %3320  ;;  %v709_v45 = vsub.f32 %v3727_v55, %v3754_v7  ;;  %v397_v58 = vrot.slane %v396_v33, 4 }
  0x9f   : > { %v537_v57 = vsub.f32 2.0, %v505_v9  ;;  %v561_v22 = vmul.f32 %v3716_v49, %v529_v63  ;;  %v3818_v21 = vmul.f32 %v3734_v59, %v530_v15  ;;  %vm3821_vm5 = vcmp.lt.f32.partialorder %v346_v10, 1e-14  ;;  %v675_v15 = vld [vmem:[%s5209_s1 + $0x10] sm:$0xff] }
  0xa0   : > { %v389_v38 = vmin.f32 %v387_v4, %v388_v18  ;;  %v553_v30 = vsub.f32 2.0, %v521_v19  ;;  %v522_v4 = vmul.f32 %v3321_v17, %v3730_v56  ;;  %v398_v56 = vmin.f32 %v396_v33, %v397_v58  ;;  %v3323_v19 = vpop.eup %3322 }
  0xa1   : > { %v331_v18 = vand.u32 2147483647, %v3768_v25  ;;  %v506_v44 = vmul.f32 %v3323_v19, %v3693_v39  ;;  %3324 = vrcp.f32 %v3781_v5  ;;  %v5272_v6 = vand.u32 2147483647, %v3681_v32 }
  0xa2   : > { %v390_v1 = vrot.slane %v389_v38, 2  ;;  %v554_v23 = vsub.f32 2.0, %v522_v4  ;;  %v399_v29 = vrot.slane %v398_v56, 2  ;;  %v578_v4 = vmul.f32 %v3724_v54, %v546_v37 }
  0xa3   : > { %v403_v58 = vmin.f32 %v5226_v62, %v331_v18  ;;  %v585_v14 = vmul.f32 %v3319_v8, %v553_v30  ;;  %v347_v62 = vand.u32 2147483647, %v3781_v5  ;;  %v538_v54 = vsub.f32 2.0, %v506_v44 }
  0xa4   : > { %v391_v52 = vmin.f32 %v389_v38, %v390_v1  ;;  %v3812_v1 = vand.u32 4294901760, %v709_v45  ;;  %v569_v38 = vmul.f32 %v3317_v3, %v537_v57  ;;  %v400_v2 = vmin.f32 %v398_v56, %v399_v29 }
  0xa5   : > { %v404_v28 = vmin.f32 %v403_v58, %v339_v47  ;;  %v586_v49 = vmul.f32 %v3321_v17, %v554_v23  ;;  %v5266_v57 = vand.u32 2147483647, %v3679_v31  ;;  %v3832_v3 = vsub.f32 %v681_v36, %v3804_v46 }
  0xa6   : > { %v392_v33 = vrot.slane %v391_v52, 1  ;;  %v401_v59 = vrot.slane %v400_v2, 1  ;;  %v3839_v23 = vsel %vm676_vm0, %v675_v15, 0  ;;  %v5269_v30 = vand.u32 2147483647, %v3693_v39 }
  0xa7   : > { %vm3827_vm6 = vcmp.lt.f32.partialorder %v5266_v57, 1e-14  ;;  %v405_v31 = vmin.f32 %v404_v28, %v347_v62  ;;  %vm3867_vm9 = vcmp.lt.f32.partialorder %v5272_v6, 1e-14  ;;  %v570_v11 = vmul.f32 %v3323_v19, %v538_v54  ;;  %v3875_v16 = vpop.eup %3324 }
  0xa8   : > { %v393_v43 = vmin.f32 %v391_v52, %v392_v33  ;;  %vm3845_vm8 = vcmp.lt.f32.partialorder %v5269_v30, 1e-14  ;;  %v402_v9 = vmin.f32 %v400_v2, %v401_v59  ;;  %v3872_v36 = vand.u32 4294901760, %v3832_v3 }
  0xa9   : > { %3326 = vrcp.f32 %v3719_v50  ;;  %v3889_v33 = vand.u32 4294901760, %v3839_v23  ;;  %vm3961_vm11 = vcmp.lt.f32.partialorder %v347_v62, 1e-14  ;;  %vm3967_vm12 = vcmp.lt.f32.partialorder %v339_v47, 1e-14 }
  0xaa   : > { %vm457_vm7 = vcmp.lt.f32.partialorder %v393_v43, 1e-14  ;;  %5275 = vst [vmem:[#allocation17_spill] sm:$0xff] %v3872_v36  ;;  %3328 = vrcp.f32 %v3768_v25  ;;  %vm458_vm10 = vcmp.lt.f32.partialorder %v402_v9, 1e-14  ;;  %v717_v53 = vsub.f32 %v3832_v3, %v3872_v36 }
  0xab   : > { %v633_v8 = vsel %vm457_vm7, 0.0, %v585_v14  ;;  %v625_v10 = vsel %vm457_vm7, 0.0, %v577_v35  ;;  %v617_v44 = vsel %vm457_vm7, 0.0, %v569_v38  ;;  %v609_v17 = vsel %vm457_vm7, 0.0, %v561_v22 }
  0xac   : > { %v665_v43 = vsel %vm3783_vm1, 1.0, %v633_v8  ;;  %v657_v63 = vsel %vm3787_vm2, 1.0, %v625_v10  ;;  %v649_v45 = vsel %vm3791_vm3, 1.0, %v617_v44  ;;  %v641_v14 = vsel %vm3795_vm4, 1.0, %v609_v17 }
  0xad   : > { %v3857_v28 = vand.u32 4294901760, %v665_v43  ;;  %v3859_v22 = vand.u32 4294901760, %v657_v63  ;;  %v3861_v39 = vand.u32 4294901760, %v649_v45  ;;  %v3863_v37 = vand.u32 4294901760, %v641_v14 }
  0xae   : > { %v406_v35 = vrot.slane %v405_v31, 4  ;;  %v634_v2 = vsel %vm458_vm10, 0.0, %v586_v49  ;;  %v626_v54 = vsel %vm458_vm10, 0.0, %v578_v4  ;;  %v618_v10 = vsel %vm458_vm10, 0.0, %v570_v11 }
  0xaf   : > { %699 = vmatpush.msra.mxu0 %v3857_v28  ;;  %833 = vmatpush.msra.mxu3 %v3857_v28  ;;  %v744_v52 = vsub.f32 %v665_v43, %v3857_v28  ;;  %v750_v32 = vsub.f32 %v657_v63, %v3859_v22  ;;  %v3882_v58 = vsub.f32 %v649_v45, %v3861_v39  ;;  %v666_v15 = vsel %vm3821_vm5, 1.0, %v634_v2  ;;  %v3906_v30 = vpop.eup %3326 }
  0xb0   : > { %v3886_v19 = vsub.f32 %v641_v14, %v3863_v37  ;;  %v658_v59 = vsel %vm3827_vm6, 1.0, %v626_v54  ;;  %v3902_v49 = vand.u32 4294901760, %v666_v15  ;;  %v650_v48 = vsel %vm3845_vm8, 1.0, %v618_v10  ;;  %v3914_v45 = vpop.eup %3328 }
  0xb1   : > { %701 = vmatpush.msra.mxu0 %v3859_v22  ;;  %794 = vmatpush.msra.mxu2 %v744_v52  ;;  %v745_v38 = vand.u32 4294901760, %v744_v52  ;;  %v751_v57 = vand.u32 4294901760, %v750_v32  ;;  %v757_v8 = vand.u32 4294901760, %v3882_v58  ;;  %v3904_v4 = vand.u32 4294901760, %v658_v59 }
  0xb2   : > { %835 = vmatpush.msra.mxu3 %v3859_v22  ;;  %v763_v29 = vand.u32 4294901760, %v3886_v19  ;;  %v610_v43 = vsel %vm458_vm10, 0.0, %v3818_v21  ;;  %v407_v63 = vmin.f32 %v405_v31, %v406_v35  ;;  %v3919_v6 = vsub.f32 %v666_v15, %v3902_v49 }
  0xb3   : > { %703 = vmatpush.msra.mxu0 %v3861_v39  ;;  %797 = vmatpush.msra.mxu2 %v750_v32  ;;  %v746_v44 = vsub.f32 %v744_v52, %v745_v38  ;;  %v752_v17 = vsub.f32 %v750_v32, %v751_v57  ;;  %v3922_v11 = vsub.f32 %v658_v59, %v3904_v4  ;;  %v3929_v31 = vand.u32 4294901760, %v650_v48 }
  0xb4   : > { %837 = vmatpush.msra.mxu3 %v3861_v39  ;;  %v758_v21 = vsub.f32 %v3882_v58, %v757_v8  ;;  %v642_v9 = vsel %vm3867_vm9, 1.0, %v610_v43  ;;  %v3935_v52 = vsub.f32 %v3839_v23, %v3889_v33  ;;  %v992_v32 = vand.u32 4294901760, %v3919_v6 }
  0xb5   : > { %705 = vmatpush.msra.mxu0 %v3863_v37  ;;  %800 = vmatpush.msra.mxu2 %v3882_v58  ;;  %v747_v14 = vand.u32 4294901760, %v746_v44  ;;  %v753_v35 = vand.u32 4294901760, %v752_v17  ;;  %v998_v2 = vand.u32 4294901760, %v3922_v11  ;;  %v3940_v54 = vand.u32 4294901760, %v642_v9 }
  0xb6   : > { %839 = vmatpush.msra.mxu3 %v3863_v37  ;;  %711 = vmatmul.f32.vlgmr.msra.gmra.mxu0 %v3812_v1  ;;  %v3944_v56 = vsub.f32 %v650_v48, %v3929_v31  ;;  %v764_v58 = vsub.f32 %v3886_v19, %v763_v29  ;;  %v408_v23 = vrot.slane %v407_v63, 2  ;;  %v523_v15 = vmul.f32 %v3875_v16, %v3781_v5 }
  0xb7   : > { %843 = vmatmul.f32.vlgmr.msra.gmra.mxu3 %v3754_v7  ;;  %874 = vmatpush.msrb.mxu0 %v745_v38  ;;  %v993_v38 = vsub.f32 %v3919_v6, %v992_v32  ;;  %v999_v59 = vsub.f32 %v3922_v11, %v998_v2  ;;  %v3957_v10 = vsub.f32 %v642_v9, %v3940_v54  ;;  %3330 = vrcp.f32 %v3737_v60 }
  0xb8   : > { %748 = vmatpush.msra.mxu1 %v747_v14  ;;  %803 = vmatpush.msra.mxu2 %v3886_v19  ;;  %v5228_v17 = vand.u32 4294901760, %v3944_v56  ;;  %v409_v48 = vmin.f32 %v407_v63, %v408_v23  ;;  %v555_v5 = vsub.f32 2.0, %v523_v15  ;;  %v3975_v14 = vand.u32 4294901760, %v717_v53 }
  0xb9   : > { %806 = vmatmul.f32.vlgmr.msra.gmra.mxu2 %v3727_v55  ;;  %878 = vmatpush.msrb.mxu0 %v751_v57  ;;  %v759_v57 = vand.u32 4294901760, %v758_v21  ;;  %v994_v62 = vand.u32 4294901760, %v993_v38  ;;  %v5227_v43 = vand.u32 4294901760, %v3957_v10  ;;  %v515_v47 = vmul.f32 %v3906_v30, %v3719_v50 }
  0xba   : > { %946 = vmatpush.msrb.mxu2 %v3902_v49  ;;  %754 = vmatpush.msra.mxu1 %v753_v35  ;;  %v1005_v21 = vsub.f32 %v3944_v56, %v5228_v17  ;;  %v765_v9 = vand.u32 4294901760, %v764_v58  ;;  %v3984_v63 = vand.u32 4294901760, %v3935_v52  ;;  %v410_v35 = vrot.slane %v409_v48, 1 }
  0xbb   : > { %882 = vmatpush.msrb.mxu0 %v757_v8  ;;  %995 = vmatpush.msrb.mxu3 %v994_v62  ;;  %v1000_v8 = vand.u32 4294901760, %v999_v59  ;;  %v1011_v53 = vsub.f32 %v3957_v10, %v5227_v43  ;;  %v547_v50 = vsub.f32 2.0, %v515_v47  ;;  %v507_v23 = vmul.f32 %v3914_v45, %v3768_v25 }
  0xbc   : > { %948 = vmatpush.msrb.mxu2 %v3904_v4  ;;  %760 = vmatpush.msra.mxu1 %v759_v57  ;;  %v411_v15 = vmin.f32 %v409_v48, %v410_v35  ;;  %v587_v58 = vmul.f32 %v3875_v16, %v555_v5  ;;  %v340_v38 = vand.u32 2147483647, %v3721_v51  ;;  %v5280_v57 = vand.u32 2147483647, %v3741_v0 }
  0xbd   : > { %886 = vmatpush.msrb.mxu0 %v763_v29  ;;  %v5281_v29 = vand.u32 2147483647, %v3739_v61  ;;  %v3331_v62 = vpop.eup %3330  ;;  %1001 = vmatpush.msrb.mxu3 %v1000_v8  ;;  %v1006_v43 = vand.u32 4294901760, %v1005_v21  ;;  %v579_v47 = vmul.f32 %v3906_v30, %v547_v50  ;;  %v539_v17 = vsub.f32 2.0, %v507_v23 }
  0xbe   : > { %950 = vmatpush.msrb.mxu2 %v3929_v31  ;;  %766 = vmatpush.msra.mxu1 %v765_v9  ;;  %3332 = vrcp.f32 %v3765_v24  ;;  %vm459_vm13 = vcmp.lt.f32.partialorder %v411_v15, 1e-14  ;;  %v499_v16 = vmul.f32 %v3331_v62, %v3737_v60  ;;  %v348_v48 = vand.u32 2147483647, %v3765_v24 }
  0xbf   : > { %v412_v59 = vmin.f32 %v5281_v29, %v5280_v57  ;;  %1041 = vmatpush.msra.mxu0 %v3919_v6  ;;  %768 = vmatmul.f32.vlgmr.msra.gmra.mxu1 %v3698_v41  ;;  %v1012_v21 = vand.u32 4294901760, %v1011_v53  ;;  %v635_v30 = vsel %vm459_vm13, 0.0, %v587_v58  ;;  %v627_v9 = vsel %vm459_vm13, 0.0, %v579_v47 }
  0xc0   : > { %719 = vmatmul.f32.gmra.mxu0 %v3975_v14  ;;  %1007 = vmatpush.msrb.mxu3 %v1006_v43  ;;  %v571_v35 = vmul.f32 %v3914_v45, %v539_v17  ;;  %v667_v8 = vsel %vm3961_vm11, 1.0, %v635_v30  ;;  %v659_v50 = vsel %vm3967_vm12, 1.0, %v627_v9  ;;  %v531_v43 = vsub.f32 2.0, %v499_v16 }
  0xc1   : > { %v413_v5 = vmin.f32 %v412_v59, %v340_v38  ;;  %913 = vmatpush.msrb.mxu1 %v3857_v28  ;;  %849 = vmatmul.f32.gmra.mxu3 %v3872_v36  ;;  %v725_v45 = vsub.f32 %v3935_v52, %v3984_v63  ;;  %3334 = vrcp.f32 %v3721_v51  ;;  %v4029_v23 = vand.u32 4294901760, %v667_v8 }
  0xc2   : > { %952 = vmatpush.msrb.mxu2 %v3940_v54  ;;  %1013 = vmatpush.msrb.mxu3 %v1012_v21  ;;  %v619_v17 = vsel %vm459_vm13, 0.0, %v571_v35  ;;  %v563_v19 = vmul.f32 %v3331_v62, %v531_v43  ;;  %v4031_v58 = vand.u32 4294901760, %v659_v50  ;;  %vm363_vm14 = vcmp.lt.f32.partialorder %v331_v18, 1e-14 }
  0xc3   : > { %v414_v28 = vmin.f32 %v413_v5, %v348_v48  ;;  %1044 = vmatpush.msra.mxu0 %v3922_v11  ;;  %811 = vmatmul.f32.gmra.mxu2 %v3832_v3  ;;  %3336 = vrcp.f32 %v3741_v0  ;;  %v651_v6 = vsel %vm363_vm14, 1.0, %v619_v17  ;;  %v4044_v25 = vand.u32 4294901760, %v725_v45 }
  0xc4   : > { %1160 = vmatpush.msra.mxu3 %v3902_v49  ;;  %1121 = vmatpush.msra.mxu2 %v992_v32  ;;  %v3333_v53 = vpop.eup %3332  ;;  %v5282_v32 = vand.u32 2147483647, %v3737_v60  ;;  %v611_v57 = vsel %vm459_vm13, 0.0, %v563_v19  ;;  %3338 = vrcp.f32 %v3739_v61  ;;  %v5283_v15 = vand.u32 4294901760, %v3944_v56 }
  0xc5   : > { %v415_v44 = vrot.slane %v414_v28, 4  ;;  %915 = vmatpush.msrb.mxu1 %v3859_v22  ;;  %1047 = vmatpush.msra.mxu0 %v3944_v56  ;;  %v524_v29 = vmul.f32 %v3333_v53, %v3765_v24  ;;  %v4056_v11 = vand.u32 4294901760, %v651_v6  ;;  %v5233_v56 = vand.u32 2147483647, %v3668_v27 }
  0xc6   : > { %1162 = vmatpush.msra.mxu3 %v3904_v4  ;;  %vm355_vm15 = vcmp.lt.f32.partialorder %v5282_v32, 1e-14  ;;  %1125 = vmatpush.msra.mxu2 %v998_v2  ;;  %v4059_v2 = vsub.f32 %v659_v50, %v4031_v58  ;;  %v4072_v30 = vsub.f32 %v3640_v12, %v3685_v34  ;;  %v325_v35 = vand.u32 2147483647, %v3665_v26 }
  0xc7   : > { %v416_v22 = vmin.f32 %v414_v28, %v415_v44  ;;  %917 = vmatpush.msrb.mxu1 %v3861_v39  ;;  %v643_v18 = vsel %vm355_vm15, 1.0, %v611_v57  ;;  %1050 = vmatpush.msra.mxu0 %v3957_v10  ;;  %v3335_v60 = vpop.eup %3334  ;;  %v4054_v39 = vsub.f32 %v667_v8, %v4029_v23  ;;  %v556_v5 = vsub.f32 2.0, %v524_v29 }
  0xc8   : > { %1164 = vmatpush.msra.mxu3 %v3929_v31  ;;  %1129 = vmatpush.msra.mxu2 %v5283_v15  ;;  %v4063_v62 = vand.u32 4294901760, %v643_v18  ;;  %v516_v21 = vmul.f32 %v3335_v60, %v3721_v51  ;;  %v4082_v8 = vsub.f32 %v651_v6, %v4056_v11  ;;  %v1245_v50 = vand.u32 4294901760, %v4059_v2 }
  0xc9   : > { %v417_v59 = vrot.slane %v416_v22, 2  ;;  %919 = vmatpush.msrb.mxu1 %v3863_v37  ;;  %v3337_v16 = vpop.eup %3336  ;;  %v5284_v37 = vand.u32 4294901760, %v3957_v10  ;;  %727 = vmatmul.f32.gmra.mxu0 %v4044_v25  ;;  %v333_v10 = vand.u32 2147483647, %v3696_v40  ;;  %v1239_v12 = vand.u32 4294901760, %v4054_v39 }
  0xca   : > { %1166 = vmatpush.msra.mxu3 %v3940_v54  ;;  %772 = vmatmul.f32.gmra.mxu1 %v3804_v46  ;;  %v508_v9 = vmul.f32 %v3337_v16, %v3741_v0  ;;  %v548_v43 = vsub.f32 2.0, %v516_v21  ;;  %v3339_v28 = vpop.eup %3338  ;;  %v4087_v45 = vsub.f32 %v643_v18, %v4063_v62  ;;  %v341_v19 = vand.u32 2147483647, %v3649_v20 }
  0xcb   : > { %1080 = vmatpush.msra.mxu1 %v3902_v49  ;;  %v418_v47 = vmin.f32 %v416_v22, %v417_v59  ;;  %1133 = vmatpush.msra.mxu2 %v5284_v37  ;;  %v588_v44 = vmul.f32 %v3333_v53, %v556_v5  ;;  %v500_v32 = vmul.f32 %v3339_v28, %v3739_v61  ;;  %3340 = vrcp.f32 %v4072_v30 }
  0xcc   : > { %855 = vmatmul.f32.gmra.mxu3 %v3984_v63  ;;  %816 = vmatmul.f32.gmra.mxu2 %v3935_v52  ;;  %v540_v6 = vsub.f32 2.0, %v508_v9  ;;  %v580_v57 = vmul.f32 %v3335_v60, %v548_v43  ;;  %v349_v22 = vand.u32 2147483647, %v4072_v30  ;;  %v4102_v29 = vsub.f32 %v3642_v13, %v3685_v34 }
  0xcd   : > { %v419_v49 = vrot.slane %v418_v47, 1  ;;  %1082 = vmatpush.msra.mxu1 %v3904_v4  ;;  %v421_v4 = vmin.f32 %v325_v35, %v333_v10  ;;  %v334_v59 = vand.u32 2147483647, %v3702_v42  ;;  %v5229_v15 = vand.u32 4294901760, %v4087_v45 }
  0xce   : > { %vm380_vm1 = vcmp.lt.f32.partialorder %v348_v48, 1e-14  ;;  %v4116_v13 = vsub.f32 %v4054_v39, %v1239_v12  ;;  %vm372_vm2 = vcmp.lt.f32.partialorder %v340_v38, 1e-14  ;;  %v532_v37 = vsub.f32 2.0, %v500_v32 }
  0xcf   : > { %v420_v17 = vmin.f32 %v418_v47, %v419_v49  ;;  %1084 = vmatpush.msra.mxu1 %v3929_v31  ;;  %v422_v18 = vmin.f32 %v421_v4, %v341_v19  ;;  %v5231_v31 = vand.u32 4294901760, %v4082_v8  ;;  %v4125_v24 = vsub.f32 %v4059_v2, %v1245_v50 }
  0xd0   : > { %3342 = vrcp.f32 %v3649_v20  ;;  %v4141_v49 = vsub.f32 %v4087_v45, %v5229_v15  ;;  %v5285_v9 = vand.u32 2147483647, %v3741_v0  ;;  %v5286_v32 = vand.u32 2147483647, %v3739_v61 }
  0xd1   : > { %vm460_vm0 = vcmp.lt.f32.partialorder %v420_v17, 1e-14  ;;  %1086 = vmatpush.msra.mxu1 %v3940_v54  ;;  %v423_v47 = vmin.f32 %v422_v18, %v349_v22  ;;  %888 = vmatmul.f32.vlgmr.msrb.gmra.mxu0 %v3698_v41  ;;  %v572_v54 = vmul.f32 %v3337_v16, %v540_v6  ;;  %v3341_v21 = vpop.eup %3340  ;;  %v4133_v51 = vsub.f32 %v4082_v8, %v5231_v31 }
  0xd2   : > { %v636_v53 = vsel %vm460_vm0, 0.0, %v588_v44  ;;  %v628_v60 = vsel %vm460_vm0, 0.0, %v580_v57  ;;  %776 = vmatmul.f32.gmra.mxu1 %v3889_v33  ;;  %1193 = vmatpush.msrb.mxu0 %v4029_v23  ;;  %3344 = vrcp.f32 %v3696_v40  ;;  %vm364_vm3 = vcmp.lt.f32.partialorder %v5285_v9, 1e-14 }
  0xd3   : > { %v668_v48 = vsel %vm380_vm1, 1.0, %v636_v53  ;;  %v424_v5 = vrot.slane %v423_v47, 4  ;;  %v660_v38 = vsel %vm372_vm2, 1.0, %v628_v60  ;;  %v620_v16 = vsel %vm460_vm0, 0.0, %v572_v54 }
  0xd4   : > { %1015 = vmatmul.f32.vlgmr.msrb.gmra.mxu3 %v3698_v41  ;;  %958 = vmatmul.f32.vlgmr.msrb.gmra.mxu2 %v3812_v1  ;;  %v525_v4 = vmul.f32 %v3341_v21, %v4072_v30  ;;  %v1241_v44 = vand.u32 4294901760, %v4116_v13  ;;  %v4149_v6 = vand.u32 4294901760, %v668_v48  ;;  %vm4153_vm4 = vcmp.lt.f32.partialorder %v5286_v32, 1e-14 }
  0xd5   : > { %1327 = vmatpush.msrb.mxu3 %v4029_v23  ;;  %v425_v43 = vmin.f32 %v423_v47, %v424_v5  ;;  %1195 = vmatpush.msrb.mxu0 %v4031_v58  ;;  %v564_v18 = vmul.f32 %v3339_v28, %v532_v37  ;;  %v4158_v0 = vand.u32 4294901760, %v660_v38  ;;  %v652_v30 = vsel %vm364_vm3, 1.0, %v620_v16 }
  0xd6   : > { %1288 = vmatpush.msrb.mxu2 %v4054_v39  ;;  %3346 = vrcp.f32 %v3665_v26  ;;  %v1247_v60 = vand.u32 4294901760, %v4125_v24  ;;  %v1253_v61 = vand.u32 4294901760, %v4133_v51  ;;  %vm4166_vm5 = vcmp.lt.f32.partialorder %v349_v22, 1e-14  ;;  %v3343_v13 = vpop.eup %3342 }
  0xd7   : > { %1329 = vmatpush.msrb.mxu3 %v4031_v58  ;;  %v426_v53 = vrot.slane %v425_v43, 2  ;;  %1197 = vmatpush.msrb.mxu0 %v4056_v11  ;;  %v612_v47 = vsel %vm460_vm0, 0.0, %v564_v18  ;;  %v1259_v54 = vand.u32 4294901760, %v4141_v49  ;;  %v557_v5 = vsub.f32 2.0, %v525_v4 }
  0xd8   : > { %1291 = vmatpush.msrb.mxu2 %v4059_v2  ;;  %vm4174_vm6 = vcmp.lt.f32.partialorder %v341_v19, 1e-14  ;;  %v3345_v24 = vpop.eup %3344  ;;  %v4181_v17 = vsub.f32 %v668_v48, %v4149_v6  ;;  %v4183_v22 = vand.u32 4294901760, %v652_v30  ;;  %v517_v51 = vmul.f32 %v3343_v13, %v3649_v20 }
  0xd9   : > { %1331 = vmatpush.msrb.mxu3 %v4056_v11  ;;  %v427_v37 = vmin.f32 %v425_v43, %v426_v53  ;;  %1199 = vmatpush.msrb.mxu0 %v4063_v62  ;;  %vm4188_vm7 = vcmp.lt.f32.partialorder %v333_v10, 1e-14  ;;  %v4195_v19 = vsub.f32 %v660_v38, %v4158_v0  ;;  %v644_v48 = vsel %vm4153_vm4, 1.0, %v612_v47  ;;  %v5295_v10 = vld [vmem:[#allocation10_spill] sm:$0xff] }
  0xda   : > { %1294 = vmatpush.msrb.mxu2 %v4082_v8  ;;  %892 = vmatmul.f32.gmra.mxu0 %v3804_v46  ;;  %v509_v43 = vmul.f32 %v3345_v24, %v3696_v40  ;;  %v549_v20 = vsub.f32 2.0, %v517_v51  ;;  %v342_v4 = vand.u32 2147483647, %v5295_v10  ;;  %v430_v32 = vmin.f32 %v5233_v56, %v334_v59 }
  0xdb   : > { %1333 = vmatpush.msrb.mxu3 %v4063_v62  ;;  %v428_v9 = vrot.slane %v427_v37, 1  ;;  %921 = vmatmul.f32.vlgmr.msrb.gmra.mxu1 %v3698_v41  ;;  %3348 = vrcp.f32 %v4102_v29  ;;  %v589_v40 = vmul.f32 %v3341_v21, %v557_v5  ;;  %v350_v51 = vand.u32 2147483647, %v4102_v29 }
  0xdc   : > { %1019 = vmatmul.f32.gmra.mxu3 %v3804_v46  ;;  %v3347_v38 = vpop.eup %3346  ;;  %1242 = vmatpush.msrb.mxu1 %v1241_v44  ;;  %v541_v18 = vsub.f32 2.0, %v509_v43  ;;  %3350 = vrcp.f32 %v5295_v10  ;;  %v581_v53 = vmul.f32 %v3343_v13, %v549_v20  ;;  %v431_v15 = vmin.f32 %v430_v32, %v342_v4 }
  0xdd   : > { %1297 = vmatpush.msrb.mxu2 %v4087_v45  ;;  %v429_v57 = vmin.f32 %v427_v37, %v428_v9  ;;  %v501_v47 = vmul.f32 %v3347_v38, %v3665_v26  ;;  %v4216_v44 = vsub.f32 %v652_v30, %v4183_v22  ;;  %3352 = vrcp.f32 %v3702_v42 }
  0xde   : > { %966 = vmatmul.f32.gmra.mxu2 %v3975_v14  ;;  %1248 = vmatpush.msrb.mxu1 %v1247_v60  ;;  %v573_v37 = vmul.f32 %v3345_v24, %v541_v18  ;;  %v432_v9 = vmin.f32 %v431_v15, %v350_v51  ;;  %v4221_v43 = vand.u32 4294901760, %v644_v48  ;;  %3354 = vrcp.f32 %v3668_v27 }
  0xdf   : > { %vm461_vm8 = vcmp.lt.f32.partialorder %v429_v57, 1e-14  ;;  %v533_v13 = vsub.f32 2.0, %v501_v47  ;;  %v5232_v16 = vand.u32 4294901760, %v4195_v19  ;;  %v5234_v49 = vand.u32 4294901760, %v4216_v44 }
  0xe0   : > { %v637_v21 = vsel %vm461_vm8, 0.0, %v589_v40  ;;  %v629_v5 = vsel %vm461_vm8, 0.0, %v581_v53  ;;  %1254 = vmatpush.msrb.mxu1 %v1253_v61  ;;  %v621_v60 = vsel %vm461_vm8, 0.0, %v573_v37  ;;  %v5230_v61 = vand.u32 4294901760, %v4181_v17 }
  0xe1   : > { %v4225_v20 = vsel %vm4166_vm5, 1.0, %v637_v21  ;;  %v4229_v30 = vsel %vm4174_vm6, 1.0, %v629_v5  ;;  %v3349_v24 = vpop.eup %3348  ;;  %v4234_v32 = vsel %vm4188_vm7, 1.0, %v621_v60  ;;  %v565_v40 = vmul.f32 %v3347_v38, %v533_v13 }
  0xe2   : > { %v3351_v15 = vpop.eup %3350  ;;  %1260 = vmatpush.msrb.mxu1 %v1259_v54  ;;  %896 = vmatmul.f32.gmra.mxu0 %v3889_v33  ;;  %v433_v28 = vrot.slane %v432_v9, 4  ;;  %vm357_vm9 = vcmp.lt.f32.partialorder %v325_v35, 1e-14  ;;  %v4247_v18 = vsub.f32 %v644_v48, %v4221_v43  ;;  %v526_v37 = vmul.f32 %v3349_v24, %v4102_v29 }
  0xe3   : > { %925 = vmatmul.f32.gmra.mxu1 %v3804_v46  ;;  %v613_v54 = vsel %vm461_vm8, 0.0, %v565_v40  ;;  %v3353_v38 = vpop.eup %3352  ;;  %v518_v21 = vmul.f32 %v3351_v15, %v5295_v10  ;;  %v1487_v26 = vsub.f32 %v4181_v17, %v5230_v61  ;;  %v1493_v48 = vsub.f32 %v4195_v19, %v5232_v16 }
  0xe4   : > { %1023 = vmatmul.f32.gmra.mxu3 %v3889_v33  ;;  %v4249_v53 = vsel %vm357_vm9, 1.0, %v613_v54  ;;  %v434_v47 = vmin.f32 %v432_v9, %v433_v28  ;;  %v510_v57 = vmul.f32 %v3353_v38, %v3702_v42  ;;  %v1499_v5 = vsub.f32 %v4216_v44, %v5234_v49  ;;  %v3355_v13 = vpop.eup %3354 }
  0xe5   : > { %v1504_v29 = vand.u32 4294901760, %v4247_v18  ;;  %v558_v60 = vsub.f32 2.0, %v526_v37  ;;  %v550_v40 = vsub.f32 2.0, %v518_v21  ;;  %v502_v54 = vmul.f32 %v3355_v13, %v3668_v27 }
  0xe6   : > { %974 = vmatmul.f32.gmra.mxu2 %v4044_v25  ;;  %v435_v35 = vrot.slane %v434_v47, 2  ;;  %v542_v28 = vsub.f32 2.0, %v510_v57  ;;  %v1488_v61 = vand.u32 4294901760, %v1487_v26  ;;  %v1494_v16 = vand.u32 4294901760, %v1493_v48  ;;  %v5308_v26 = vld [vmem:[#allocation14_spill] sm:$0xff] }
  0xe7   : > { %v1500_v56 = vand.u32 4294901760, %v1499_v5  ;;  %v534_v49 = vsub.f32 2.0, %v502_v54  ;;  %vm4274_vm10 = vcmp.lt.f32.partialorder %v350_v51, 1e-14  ;;  %vm4280_vm11 = vcmp.lt.f32.partialorder %v342_v4, 1e-14 }
  0xe8   : > { %v436_v9 = vmin.f32 %v434_v47, %v435_v35  ;;  %v1505_v47 = vsub.f32 %v4247_v18, %v1504_v29  ;;  %v590_v39 = vmul.f32 %v3349_v24, %v558_v60  ;;  %vm366_vm13 = vcmp.lt.f32.partialorder %v334_v59, 1e-14  ;;  %v5307_v54 = vld [vmem:[#allocation16_spill] sm:$0xff] }
  0xe9   : > { %v566_v35 = vmul.f32 %v3355_v13, %v534_v49  ;;  %v5303_v49 = vand.u32 4294901760, %v4087_v45  ;;  %v5306_v45 = vld [vmem:[#allocation11_spill] sm:$0xff] }
  0xea   : > { %1053 = vmatmul.f32.vlgmr.msra.gmra.mxu0 %v3727_v55  ;;  %v437_v31 = vrot.slane %v436_v9, 1  ;;  %v1506_v59 = vand.u32 4294901760, %v1505_v47  ;;  %v343_v5 = vand.u32 2147483647, %v5306_v45  ;;  %v336_v47 = vand.u32 2147483647, %v5307_v54 }
  0xeb   : > { %929 = vmatmul.f32.gmra.mxu1 %v3889_v33  ;;  %1368 = vmatpush.msra.mxu0 %v1239_v12  ;;  %v582_v12 = vmul.f32 %v3351_v15, %v550_v40  ;;  %v5301_v15 = vand.u32 4294901760, %v4082_v8 }
  0xec   : > { %1168 = vmatmul.f32.vlgmr.msra.gmra.mxu3 %v3698_v41  ;;  %v438_v21 = vmin.f32 %v436_v9, %v437_v31  ;;  %v5300_v31 = vand.u32 2147483647, %v3668_v27  ;;  %vm375_vm1 = vcmp.lt.f32.partialorder %v343_v5, 1e-14  ;;  %vm368_vm7 = vcmp.lt.f32.partialorder %v336_v47, 1e-14 }
  0xed   : > { %1489 = vmatpush.msra.mxu3 %v1488_v61  ;;  %v574_v61 = vmul.f32 %v3353_v38, %v542_v28  ;;  %1372 = vmatpush.msra.mxu0 %v1245_v50  ;;  %v5304_v38 = vld [vmem:[#allocation15_spill] sm:$0xff] }
  0xee   : > { %1135 = vmatmul.f32.vlgmr.msra.gmra.mxu2 %v3698_v41  ;;  %vm462_vm12 = vcmp.lt.f32.partialorder %v438_v21, 1e-14  ;;  %vm358_vm14 = vcmp.lt.f32.partialorder %v5300_v31, 1e-14  ;;  %v335_v57 = vand.u32 2147483647, %v5304_v38 }
  0xef   : > { %1440 = vmatpush.msra.mxu2 %v4149_v6  ;;  %1495 = vmatpush.msra.mxu3 %v1494_v16  ;;  %v638_v10 = vsel %vm462_vm12, 0.0, %v590_v39  ;;  %v630_v4 = vsel %vm462_vm12, 0.0, %v582_v12  ;;  %v622_v51 = vsel %vm462_vm12, 0.0, %v574_v61  ;;  %v614_v24 = vsel %vm462_vm12, 0.0, %v566_v35  ;;  %v5302_v16 = vld [vmem:[#allocation8_spill] sm:$0xff]  ;;  %v5309_v35 = vld [vmem:[#allocation9_spill] sm:$0xff] }
  0xf0   : > { %1376 = vmatpush.msra.mxu0 %v5301_v15  ;;  %v4297_v2 = vsel %vm4274_vm10, 1.0, %v638_v10  ;;  %v4301_v42 = vsel %vm4280_vm11, 1.0, %v630_v4  ;;  %v4303_v27 = vsel %vm366_vm13, 1.0, %v622_v51  ;;  %v4305_v50 = vsel %vm358_vm14, 1.0, %v614_v24 }
  0xf1   : > { %1442 = vmatpush.msra.mxu2 %v4158_v0  ;;  %1501 = vmatpush.msra.mxu3 %v1500_v56  ;;  %v319_v8 = vsub.f32 %v5302_v16, %v3685_v34  ;;  %v5305_v56 = vld [vmem:[#allocation13_spill] sm:$0xff]  ;;  %v328_v39 = vand.u32 2147483647, %v5308_v26  ;;  %v4340_v31 = vsub.f32 %v5309_v35, %v3685_v34  ;;  %v5310_v16 = vld [vmem:[#allocation12_spill] sm:$0xff]  ;;  %vm367_vm2 = vcmp.lt.f32.partialorder %v335_v57, 1e-14 }
  0xf2   : > { %1380 = vmatpush.msra.mxu0 %v5303_v49  ;;  %v327_v48 = vand.u32 2147483647, %v5305_v56 }
  0xf3   : > { %1444 = vmatpush.msra.mxu2 %v4183_v22  ;;  %1507 = vmatpush.msra.mxu3 %v1506_v59  ;;  %3356 = vrcp.f32 %v319_v8  ;;  %v448_v59 = vmin.f32 %v328_v39, %v336_v47  ;;  %vm360_vm8 = vcmp.lt.f32.partialorder %v328_v39, 1e-14  ;;  %v4520_v39 = vand.u32 4294901760, %v4301_v42 }
  0xf4   : > { %1058 = vmatmul.f32.gmra.mxu0 %v3832_v3  ;;  %1090 = vmatmul.f32.vlgmr.msra.gmra.mxu1 %v3754_v7  ;;  %3358 = vrcp.f32 %v5306_v45  ;;  %v439_v13 = vmin.f32 %v327_v48, %v335_v57  ;;  %vm359_vm3 = vcmp.lt.f32.partialorder %v327_v48, 1e-14 }
  0xf5   : > { %1172 = vmatmul.f32.gmra.mxu3 %v3804_v46  ;;  %1407 = vmatpush.msra.mxu1 %v4029_v23  ;;  %v351_v23 = vand.u32 2147483647, %v319_v8  ;;  %3360 = vrcp.f32 %v5304_v38 }
  0xf6   : > { %1446 = vmatpush.msra.mxu2 %v4221_v43  ;;  %v440_v9 = vmin.f32 %v439_v13, %v343_v5  ;;  %3362 = vrcp.f32 %v5305_v56  ;;  %v352_v13 = vand.u32 2147483647, %v4340_v31 }
  0xf7   : > { %1139 = vmatmul.f32.gmra.mxu2 %v3804_v46  ;;  %1409 = vmatpush.msra.mxu1 %v4031_v58  ;;  %vm4361_vm15 = vcmp.lt.f32.partialorder %v351_v23, 1e-14  ;;  %3364 = vrcp.f32 %v4340_v31 }
  0xf8   : > { %v441_v40 = vmin.f32 %v440_v9, %v351_v23  ;;  %3366 = vrcp.f32 %v5310_v16  ;;  %vm384_vm5 = vcmp.lt.f32.partialorder %v352_v13, 1e-14 }
  0xf9   : > { %1411 = vmatpush.msra.mxu1 %v4056_v11  ;;  %v3357_v60 = vpop.eup %3356  ;;  %3368 = vrcp.f32 %v5307_v54 }
  0xfa   : > { %v3359_v58 = vpop.eup %3358  ;;  %v442_v28 = vrot.slane %v441_v40, 4  ;;  %v527_v11 = vmul.f32 %v3357_v60, %v319_v8  ;;  %v344_v8 = vand.u32 2147483647, %v5310_v16  ;;  %3370 = vrcp.f32 %v5308_v26 }
  0xfb   : > { %1413 = vmatpush.msra.mxu1 %v4063_v62  ;;  %v519_v62 = vmul.f32 %v3359_v58, %v5306_v45  ;;  %v3361_v21 = vpop.eup %3360 }
  0xfc   : > { %1063 = vmatmul.f32.gmra.mxu0 %v3935_v52  ;;  %1096 = vmatmul.f32.gmra.mxu1 %v3872_v36  ;;  %v443_v37 = vmin.f32 %v441_v40, %v442_v28  ;;  %v3363_v61 = vpop.eup %3362  ;;  %v559_v10 = vsub.f32 2.0, %v527_v11  ;;  %v511_v4 = vmul.f32 %v3361_v21, %v5304_v38  ;;  %v449_v9 = vmin.f32 %v448_v59, %v344_v8  ;;  %v4414_v59 = vld [vmem:[%s3637_s13 + $0x1] ss:$2 sm:$0xff] }
  0xfd   : > { %1176 = vmatmul.f32.gmra.mxu3 %v3889_v33  ;;  %v551_v24 = vsub.f32 2.0, %v519_v62  ;;  %v503_v15 = vmul.f32 %v3363_v61, %v5305_v56  ;;  %v5311_v40 = vand.u32 4294901760, %v4181_v17  ;;  %v2666_v28 = vperm.slane %v4414_v59, 0 }
  0xfe   : > { %v444_v12 = vrot.slane %v443_v37, 2  ;;  %v543_v34 = vsub.f32 2.0, %v511_v4  ;;  %v450_v4 = vmin.f32 %v449_v9, %v352_v13  ;;  %vm376_vm6 = vcmp.lt.f32.partialorder %v344_v8, 1e-14 }
  0xff   : > { %1143 = vmatmul.f32.gmra.mxu2 %v3889_v33  ;;  %v535_v45 = vsub.f32 2.0, %v503_v15  ;;  %v583_v62 = vmul.f32 %v3359_v58, %v551_v24 }
 0x100   : > { %v445_v51 = vmin.f32 %v443_v37, %v444_v12  ;;  %v591_v37 = vmul.f32 %v3357_v60, %v559_v10  ;;  %v575_v12 = vmul.f32 %v3361_v21, %v543_v34  ;;  %v451_v10 = vrot.slane %v450_v4, 4 }
 0x101   : > { %v567_v35 = vmul.f32 %v3363_v61, %v535_v45  ;;  %v5315_v61 = vand.u32 4294901760, %v4216_v44  ;;  %v4420_v34 = vand.u32 4294901760, %v4234_v32 }
 0x102   : > { %v446_v49 = vrot.slane %v445_v51, 1  ;;  %v452_v48 = vmin.f32 %v450_v4, %v451_v10  ;;  %v4439_v4 = vand.u32 4294901760, %v4249_v53 }
 0x104   : > { %1205 = vmatmul.f32.vlgmr.msrb.gmra.mxu0 %v3812_v1  ;;  %1102 = vmatmul.f32.gmra.mxu1 %v3984_v63  ;;  %v447_v11 = vmin.f32 %v445_v51, %v446_v49  ;;  %v4401_v51 = vpop.permute.xlu2 %2684  ;;  %v453_v24 = vrot.slane %v452_v48, 2 }
 0x105   : > { %1337 = vmatmul.f32.vlgmr.msrb.gmra.mxu3 %v3754_v7  ;;  %1535 = vmatpush.msrb.mxu0 %v4181_v17  ;;  %v5314_v17 = vand.u32 4294901760, %v4195_v19  ;;  %v4474_v47 = vsub.f32 %v2666_v28, %v4401_v51 }
 0x106   : > { %1654 = vmatpush.msrb.mxu3 %v4149_v6  ;;  %vm463_vm0 = vcmp.lt.f32.partialorder %v447_v11, 1e-14 }
 0x107   : > { %1300 = vmatmul.f32.vlgmr.msrb.gmra.mxu2 %v3727_v55  ;;  %1538 = vmatpush.msrb.mxu0 %v4195_v19  ;;  %v639_v23 = vsel %vm463_vm0, 0.0, %v591_v37  ;;  %v631_v60 = vsel %vm463_vm0, 0.0, %v583_v62  ;;  %v623_v58 = vsel %vm463_vm0, 0.0, %v575_v12  ;;  %v615_v21 = vsel %vm463_vm0, 0.0, %v567_v35 }
 0x108   : > { %1615 = vmatpush.msrb.mxu2 %v5311_v40  ;;  %1656 = vmatpush.msrb.mxu3 %v4158_v0  ;;  %v4381_v19 = vsel %vm4361_vm15, 1.0, %v639_v23  ;;  %v4383_v5 = vsel %vm375_vm1, 1.0, %v631_v60  ;;  %v4385_v38 = vsel %vm367_vm2, 1.0, %v623_v58  ;;  %v4391_v57 = vsel %vm359_vm3, 1.0, %v615_v21 }
 0x109   : > { %1541 = vmatpush.msrb.mxu0 %v4216_v44  ;;  %v3365_v44 = vpop.eup %3364  ;;  %v4436_v12 = vsub.f32 %v4234_v32, %v4420_v34  ;;  %3372 = vrcp.f32 %v4474_v47 }
 0x10a   : > { %1619 = vmatpush.msrb.mxu2 %v5314_v17  ;;  %1658 = vmatpush.msrb.mxu3 %v4183_v22  ;;  %v3367_v56 = vpop.eup %3366 }
 0x10b   : > { %1544 = vmatpush.msrb.mxu0 %v4247_v18  ;;  %v520_v18 = vmul.f32 %v3367_v56, %v5310_v16  ;;  %v3369_v15 = vpop.eup %3368  ;;  %v1745_v10 = vand.u32 4294901760, %v4436_v12 }
 0x10c   : > { %1623 = vmatpush.msrb.mxu2 %v5315_v61  ;;  %1660 = vmatpush.msrb.mxu3 %v4221_v43  ;;  %v512_v40 = vmul.f32 %v3369_v15, %v5307_v54  ;;  %v4442_v60 = vpop.permute.xlu2 %2689  ;;  %v3371_v13 = vpop.eup %3370  ;;  %v4471_v54 = vsub.f32 %v4249_v53, %v4439_v4 }
 0x10d   : > { %1213 = vmatmul.f32.gmra.mxu0 %v3975_v14  ;;  %1262 = vmatmul.f32.vlgmr.msrb.gmra.mxu1 %v3698_v41  ;;  %v552_v45 = vsub.f32 2.0, %v520_v18  ;;  %v4466_v61 = vsub.f32 %v2666_v28, %v4442_v60 }
 0x10e   : > { %1343 = vmatmul.f32.gmra.mxu3 %v3872_v36  ;;  %1574 = vmatpush.msrb.mxu1 %v4149_v6  ;;  %v528_v6 = vmul.f32 %v3365_v44, %v4340_v31  ;;  %v544_v37 = vsub.f32 2.0, %v512_v40 }
 0x10f   : > { %1627 = vmatpush.msrb.mxu2 %v1504_v29  ;;  %v4407_v29 = vand.u32 4294901760, %v4225_v20  ;;  %v2716_v18 = vand.u32 2147483647, %v4466_v61  ;;  %3374 = vrcp.f32 %v4466_v61 }
 0x110   : > { %1305 = vmatmul.f32.gmra.mxu2 %v3832_v3  ;;  %1576 = vmatpush.msrb.mxu1 %v4158_v0  ;;  %v454_v0 = vmin.f32 %v452_v48, %v453_v24  ;;  %v560_v49 = vsub.f32 2.0, %v528_v6  ;;  %v576_v23 = vmul.f32 %v3369_v15, %v544_v37  ;;  %v1751_v24 = vand.u32 4294901760, %v4471_v54 }
 0x111   : > { %v2708_v6 = vand.u32 2147483647, %v4474_v47  ;;  %vm2732_vm11 = vcmp.lt.f32.partialorder %v2716_v18, 1e-14 }
 0x112   : > { %1578 = vmatpush.msrb.mxu1 %v4183_v22  ;;  %v4417_v22 = vand.u32 4294901760, %v4229_v30  ;;  %v455_v9 = vrot.slane %v454_v0, 1  ;;  %v592_v35 = vmul.f32 %v3365_v44, %v560_v49  ;;  %v504_v44 = vmul.f32 %v3371_v13, %v5308_v26 }
 0x113   : > { %v1752_v37 = vsub.f32 %v4471_v54, %v1751_v24  ;;  %v2740_v26 = vmin.f32 %v2708_v6, %v2716_v18  ;;  %vm2724_vm10 = vcmp.lt.f32.partialorder %v2708_v6, 1e-14 }
 0x114   : > { %1580 = vmatpush.msrb.mxu1 %v4221_v43  ;;  %v4425_v43 = vsub.f32 %v4225_v20, %v4407_v29  ;;  %v456_v11 = vmin.f32 %v454_v0, %v455_v9  ;;  %v4432_v62 = vsub.f32 %v4229_v30, %v4417_v22  ;;  %v584_v20 = vmul.f32 %v3367_v56, %v552_v45 }
 0x115   : > { %1221 = vmatmul.f32.gmra.mxu0 %v4044_v25  ;;  %1266 = vmatmul.f32.gmra.mxu1 %v3804_v46  ;;  %v536_v48 = vsub.f32 2.0, %v504_v44  ;;  %v1746_v0 = vsub.f32 %v4436_v12, %v1745_v10  ;;  %v4501_v45 = vand.u32 4294901760, %v4297_v2 }
 0x116   : > { %1349 = vmatmul.f32.gmra.mxu3 %v3984_v63  ;;  %v1733_v17 = vand.u32 4294901760, %v4425_v43  ;;  %vm464_vm4 = vcmp.lt.f32.partialorder %v456_v11, 1e-14  ;;  %v1739_v16 = vand.u32 4294901760, %v4432_v62 }
 0x117   : > { %v640_v30 = vsel %vm464_vm4, 0.0, %v592_v35  ;;  %v632_v32 = vsel %vm464_vm4, 0.0, %v584_v20  ;;  %v624_v31 = vsel %vm464_vm4, 0.0, %v576_v23  ;;  %v568_v15 = vmul.f32 %v3371_v13, %v536_v48 }
 0x118   : > { %1310 = vmatmul.f32.gmra.mxu2 %v3935_v52  ;;  %v4453_v58 = vsel %vm384_vm5, 1.0, %v640_v30  ;;  %v4455_v21 = vsel %vm376_vm6, 1.0, %v632_v32  ;;  %v4463_v8 = vsel %vm368_vm7, 1.0, %v624_v31  ;;  %v1734_v56 = vsub.f32 %v4425_v43, %v1733_v17 }
 0x119   : > { %v1740_v53 = vsub.f32 %v4432_v62, %v1739_v16  ;;  %v616_v9 = vsel %vm464_vm4, 0.0, %v568_v15  ;;  %v1747_v11 = vand.u32 4294901760, %v1746_v0  ;;  %v4524_v35 = vsub.f32 %v4297_v2, %v4501_v45 }
 0x11a   : > { %v1735_v49 = vand.u32 4294901760, %v1734_v56  ;;  %v4508_v40 = vsel %vm360_vm8, 1.0, %v616_v9  ;;  %v4527_v20 = vand.u32 4294901760, %v4303_v27  ;;  %v1753_v23 = vand.u32 4294901760, %v1752_v37  ;;  %v3373_v9 = vpop.eup %3372 }
 0x11b   : > { %v1741_v28 = vand.u32 4294901760, %v1740_v53  ;;  %v2741_v30 = vrot.slane %v2740_v26, 4  ;;  %v4531_v32 = vsub.f32 %v4301_v42, %v4520_v39  ;;  %v4534_v31 = vand.u32 4294901760, %v4305_v50  ;;  %v3375_v37 = vpop.eup %3374 }
 0x11c   : > { %v1980_v13 = vand.u32 4294901760, %v4524_v35  ;;  %v4542_v2 = vsub.f32 %v4303_v27, %v4527_v20 }
 0x11d   : > { %1382 = vmatmul.f32.vlgmr.msra.gmra.mxu0 %v3698_v41  ;;  %1270 = vmatmul.f32.gmra.mxu1 %v3889_v33  ;;  %v2742_v44 = vmin.f32 %v2740_v26, %v2741_v30  ;;  %v1986_v42 = vand.u32 4294901760, %v4531_v32  ;;  %v4548_v56 = vsub.f32 %v4305_v50, %v4534_v31  ;;  %v2667_v26 = vperm.slane %v4414_v59, 1 }
 0x11e   : > { %1509 = vmatmul.f32.vlgmr.msra.gmra.mxu3 %v3698_v41  ;;  %1687 = vmatpush.msra.mxu0 %v4407_v29  ;;  %v1981_v48 = vsub.f32 %v4524_v35, %v1980_v13  ;;  %v5235_v27 = vand.u32 4294901760, %v4542_v2 }
 0x11f   : > { %1821 = vmatpush.msra.mxu3 %v4407_v29  ;;  %v2743_v15 = vrot.slane %v2742_v44, 2  ;;  %v1987_v0 = vsub.f32 %v4531_v32, %v1986_v42  ;;  %v1998_v50 = vand.u32 4294901760, %v4548_v56 }
 0x120   : > { %1452 = vmatmul.f32.vlgmr.msra.gmra.mxu2 %v3812_v1  ;;  %1689 = vmatpush.msra.mxu0 %v4417_v22 }
 0x121   : > { %1782 = vmatpush.msra.mxu2 %v4425_v43  ;;  %1823 = vmatpush.msra.mxu3 %v4417_v22  ;;  %v1999_v30 = vsub.f32 %v4548_v56, %v1998_v50  ;;  %v2820_v43 = vmul.f32 %v3373_v9, %v4474_v47 }
 0x122   : > { %1691 = vmatpush.msra.mxu0 %v4420_v34 }
 0x123   : > { %1785 = vmatpush.msra.mxu2 %v4432_v62  ;;  %1825 = vmatpush.msra.mxu3 %v4420_v34 }
 0x124   : > { %1693 = vmatpush.msra.mxu0 %v4439_v4 }
 0x125   : > { %1788 = vmatpush.msra.mxu2 %v4436_v12  ;;  %1827 = vmatpush.msra.mxu3 %v4439_v4  ;;  %v2836_v12 = vsub.f32 2.0, %v2820_v43 }
 0x126   : > { %1386 = vmatmul.f32.gmra.mxu0 %v3804_v46  ;;  %1415 = vmatmul.f32.vlgmr.msra.gmra.mxu1 %v3698_v41 }
 0x127   : > { %1513 = vmatmul.f32.gmra.mxu3 %v3804_v46  ;;  %1736 = vmatpush.msra.mxu1 %v1735_v49  ;;  %v1982_v49 = vand.u32 4294901760, %v1981_v48 }
 0x128   : > { %1791 = vmatpush.msra.mxu2 %v4471_v54  ;;  %v2852_v54 = vmul.f32 %v3373_v9, %v2836_v12 }
 0x129   : > { %1460 = vmatmul.f32.gmra.mxu2 %v3975_v14  ;;  %1742 = vmatpush.msra.mxu1 %v1741_v28  ;;  %v1993_v28 = vsub.f32 %v4542_v2, %v5235_v27 }
 0x12b   : > { %1748 = vmatpush.msra.mxu1 %v1747_v11  ;;  %v2744_v11 = vmin.f32 %v2742_v44, %v2743_v15  ;;  %v1994_v27 = vand.u32 4294901760, %v1993_v28  ;;  %v4583_v44 = vsub.f32 %v2667_v26, %v4442_v60  ;;  %v2000_v15 = vand.u32 4294901760, %v1999_v30 }
 0x12d   : > { %1754 = vmatpush.msra.mxu1 %v1753_v23  ;;  %v1988_v23 = vand.u32 4294901760, %v1987_v0  ;;  %v2745_v62 = vrot.slane %v2744_v11, 1 }
 0x12e   : > { %1390 = vmatmul.f32.gmra.mxu0 %v3889_v33  ;;  %1419 = vmatmul.f32.gmra.mxu1 %v3804_v46 }
 0x12f   : > { %1517 = vmatmul.f32.gmra.mxu3 %v3889_v33 }
 0x131   : > { %1468 = vmatmul.f32.gmra.mxu2 %v4044_v25 }
 0x133   : > { %v4556_v53 = vpop.f32.mrf.mxu0 }
 0x136   : > { %1547 = vmatmul.f32.vlgmr.msrb.gmra.mxu0 %v3727_v55  ;;  %1423 = vmatmul.f32.gmra.mxu1 %v3889_v33 }
 0x137   : > { %1662 = vmatmul.f32.vlgmr.msrb.gmra.mxu3 %v3698_v41  ;;  %1862 = vmatpush.msrb.mxu0 %v1733_v17  ;;  %v2828_v17 = vmul.f32 %v3375_v37, %v4466_v61 }
 0x138   : > { %1983 = vmatpush.msrb.mxu3 %v1982_v49 }
 0x139   : > { %1629 = vmatmul.f32.vlgmr.msrb.gmra.mxu2 %v3698_v41  ;;  %1866 = vmatpush.msrb.mxu0 %v1739_v16  ;;  %v4589_v16 = vsub.f32 %v2667_v26, %v4401_v51 }
 0x13a   : > { %1934 = vmatpush.msrb.mxu2 %v4501_v45  ;;  %v4578_v48 = vpop.f32.mrf.mxu3  ;;  %1989 = vmatpush.msrb.mxu3 %v1988_v23  ;;  %v5236_v23 = vand.u32 2147483647, %v4583_v44 }
 0x13b   : > { %1870 = vmatpush.msrb.mxu0 %v1745_v10  ;;  %v2844_v10 = vsub.f32 2.0, %v2828_v17  ;;  %v5237_v26 = vand.u32 2147483647, %v4589_v16  ;;  %v4626_v17 = vpop.permute.xlu0 %2920  ;;  %3376 = vrcp.f32 %v4589_v16 }
 0x13c   : > { %1936 = vmatpush.msrb.mxu2 %v4520_v39  ;;  %1995 = vmatpush.msrb.mxu3 %v1994_v27  ;;  %v4593_v49 = vpop.f32.mrf.mxu2  ;;  %v769_v28 = vpop.f32.mrf.mxu1  ;;  %v2746_v27 = vmin.f32 %v2744_v11, %v2745_v62  ;;  %3378 = vrcp.f32 %v4583_v44 }
 0x13d   : > { %v4591_v0 = vpop.f32.mrf.mxu0  ;;  %1874 = vmatpush.msrb.mxu0 %v1751_v24  ;;  %v2860_v24 = vmul.f32 %v3375_v37, %v2844_v10  ;;  %v2747_v11 = vmin.f32 %v5237_v26, %v5236_v23 }
 0x13e   : > { %1938 = vmatpush.msrb.mxu2 %v4527_v20  ;;  %2001 = vmatpush.msrb.mxu3 %v2000_v15  ;;  %vm2796_vm9 = vcmp.lt.f32.partialorder %v2746_v27, 1e-14 }
 0x13f   : > { %1552 = vmatmul.f32.gmra.mxu0 %v3832_v3  ;;  %1584 = vmatmul.f32.vlgmr.msrb.gmra.mxu1 %v3754_v7  ;;  %v2892_v9 = vsel %vm2796_vm9, 0.0, %v2860_v24  ;;  %v2748_v37 = vrot.slane %v2747_v11, 4 }
 0x140   : > { %1666 = vmatmul.f32.gmra.mxu3 %v3804_v46  ;;  %1901 = vmatpush.msrb.mxu1 %v4407_v29  ;;  %v2908_v47 = vsel %vm2732_vm11, 1.0, %v2892_v9 }
 0x141   : > { %1940 = vmatpush.msrb.mxu2 %v4534_v31  ;;  %v2749_v6 = vmin.f32 %v2747_v11, %v2748_v37  ;;  %v3377_v11 = vpop.eup %3376 }
 0x142   : > { %1633 = vmatmul.f32.gmra.mxu2 %v3804_v46  ;;  %1903 = vmatpush.msrb.mxu1 %v4417_v22  ;;  %v2884_v22 = vsel %vm2796_vm9, 0.0, %v2852_v54  ;;  %v3379_v37 = vpop.eup %3378 }
 0x143   : > { %v2900_v62 = vsel %vm2724_vm10, 1.0, %v2884_v22  ;;  %v2750_v54 = vrot.slane %v2749_v6, 2  ;;  %v770_v22 = vadd.f32 %v769_v28, %v4556_v53  ;;  %v2829_v28 = vmul.f32 %v3379_v37, %v4583_v44 }
 0x144   : > { %v4607_v30 = vpop.f32.mrf.mxu3  ;;  %1905 = vmatpush.msrb.mxu1 %v4420_v34  ;;  %v4630_v15 = vmul.f32 %v4626_v17, %v2900_v62 }
 0x145   : > { %v2751_v9 = vmin.f32 %v2749_v6, %v2750_v54  ;;  %v808_v53 = vadd.f32 %v4593_v49, %v770_v22 }
 0x146   : > { %1907 = vmatpush.msrb.mxu1 %v4439_v4  ;;  %v4616_v29 = vpop.f32.mrf.mxu0  ;;  %v812_v43 = vpop.f32.mrf.mxu2 }
 0x147   : > { %1557 = vmatmul.f32.gmra.mxu0 %v3935_v52  ;;  %1590 = vmatmul.f32.gmra.mxu1 %v3872_v36  ;;  %v773_v34 = vpop.f32.mrf.mxu1  ;;  %v4624_v4 = vpop.permute.xlu1 %2925  ;;  %v845_v54 = vadd.f32 %v4578_v48, %v808_v53  ;;  %v4714_v53 = vand.u32 4294901760, %v4385_v38 }
 0x148   : > { %1670 = vmatmul.f32.gmra.mxu3 %v3889_v33  ;;  %v4633_v61 = vmul.f32 %v4624_v4, %v2908_v47  ;;  %v774_v47 = vadd.f32 %v773_v34, %v4591_v0  ;;  %v2752_v0 = vrot.slane %v2751_v9, 1 }
 0x14a   : > { %1637 = vmatmul.f32.gmra.mxu2 %v3889_v33  ;;  %v3016_v24 = vadd.f32 %v4633_v61, %v4630_v15  ;;  %v813_v6 = vadd.f32 %v812_v43, %v774_v47  ;;  %v2753_v22 = vmin.f32 %v2751_v9, %v2752_v0  ;;  %v5320_v47 = vand.u32 2147483647, %v4583_v44 }
 0x14b   : > { %v4722_v44 = vand.u32 4294901760, %v4391_v57 }
 0x14c   : > { %v3017_v62 = vrot.slane %v3016_v24, 4  ;;  %vm2797_vm12 = vcmp.lt.f32.partialorder %v2753_v22, 1e-14  ;;  %vm4707_vm14 = vcmp.lt.f32.partialorder %v5320_v47, 1e-14  ;;  %v4739_v22 = vsub.f32 %v4385_v38, %v4714_v53 }
 0x14e   : > { %v889_v12 = vpop.f32.mrf.mxu0  ;;  %v3018_v34 = vadd.f32 %v3017_v62, %v3016_v24 }
 0x14f   : > { %v4635_v18 = vpop.f32.mrf.mxu3  ;;  %1699 = vmatmul.f32.vlgmr.msra.gmra.mxu0 %v3812_v1  ;;  %v4639_v10 = vpop.f32.mrf.mxu2  ;;  %1596 = vmatmul.f32.gmra.mxu1 %v3984_v63  ;;  %v890_v43 = vadd.f32 %v889_v12, %v845_v54 }
 0x150   : > { %1831 = vmatmul.f32.vlgmr.msra.gmra.mxu3 %v3754_v7  ;;  %v777_v27 = vpop.f32.mrf.mxu1  ;;  %2029 = vmatpush.msra.mxu0 %v4524_v35  ;;  %v5316_v35 = vand.u32 4294901760, %v4542_v2  ;;  %v3019_v26 = vrot.slane %v3018_v34, 2 }
 0x151   : > { %2148 = vmatpush.msra.mxu3 %v4501_v45  ;;  %v778_v24 = vadd.f32 %v777_v27, %v4616_v29 }
 0x152   : > { %1794 = vmatmul.f32.vlgmr.msra.gmra.mxu2 %v3727_v55  ;;  %2032 = vmatpush.msra.mxu0 %v4531_v32  ;;  %v3020_v12 = vadd.f32 %v3019_v26, %v3018_v34 }
 0x153   : > { %2109 = vmatpush.msra.mxu2 %v1980_v13  ;;  %2150 = vmatpush.msra.mxu3 %v4520_v39  ;;  %v2821_v13 = vmul.f32 %v3377_v11, %v4589_v16 }
 0x154   : > { %2035 = vmatpush.msra.mxu0 %v4542_v2  ;;  %v3021_v0 = vrot.slane %v3020_v12, 1 }
 0x155   : > { %2113 = vmatpush.msra.mxu2 %v1986_v42  ;;  %2152 = vmatpush.msra.mxu3 %v4527_v20  ;;  %v2837_v49 = vsub.f32 2.0, %v2821_v13 }
 0x156   : > { %2038 = vmatpush.msra.mxu0 %v4548_v56 }
 0x157   : > { %v4659_v23 = vpop.f32.mrf.mxu3  ;;  %2117 = vmatpush.msra.mxu2 %v5316_v35  ;;  %2154 = vmatpush.msra.mxu3 %v4534_v31  ;;  %v893_v32 = vpop.f32.mrf.mxu0  ;;  %v2845_v35 = vsub.f32 2.0, %v2829_v28  ;;  %v2853_v56 = vmul.f32 %v3377_v11, %v2837_v49  ;;  %v5317_v11 = vand.u32 2147483647, %v4589_v16 }
 0x158   : > { %1707 = vmatmul.f32.gmra.mxu0 %v3975_v14  ;;  %v4668_v42 = vpop.f32.mrf.mxu2  ;;  %1756 = vmatmul.f32.vlgmr.msra.gmra.mxu1 %v3698_v41  ;;  %v922_v2 = vpop.f32.mrf.mxu1 }
 0x159   : > { %1837 = vmatmul.f32.gmra.mxu3 %v3872_v36  ;;  %2068 = vmatpush.msra.mxu1 %v4501_v45  ;;  %v851_v36 = vadd.f32 %v4607_v30, %v813_v6  ;;  %v923_v62 = vadd.f32 %v922_v2, %v890_v43  ;;  %v2861_v48 = vmul.f32 %v3379_v37, %v2845_v35  ;;  %vm4700_vm13 = vcmp.lt.f32.partialorder %v5317_v11, 1e-14 }
 0x15a   : > { %2121 = vmatpush.msra.mxu2 %v1998_v50  ;;  %v2885_v37 = vsel %vm2797_vm12, 0.0, %v2853_v56  ;;  %v3022_v35 = vadd.f32 %v3021_v0, %v3020_v12  ;;  %v4748_v56 = vsub.f32 %v4391_v57, %v4722_v44  ;;  %v5243_v11 = vand.u32 4294901760, %v4739_v22 }
 0x15b   : > { %1799 = vmatmul.f32.gmra.mxu2 %v3832_v3  ;;  %2070 = vmatpush.msra.mxu1 %v4520_v39  ;;  %v894_v50 = vadd.f32 %v893_v32, %v851_v36  ;;  %v818_v36 = vadd.f32 %v4639_v10, %v778_v24  ;;  %v2944_v10 = vmul.f32 %v4630_v15, %v923_v62  ;;  %v2893_v16 = vsel %vm2797_vm12, 0.0, %v2861_v48 }
 0x15c   : > { %v2901_v15 = vsel %vm4700_vm13, 1.0, %v2885_v37  ;;  %v5242_v9 = vand.u32 4294901760, %v4748_v56  ;;  %v1017_v47 = vadd.f32 %v4659_v23, %v4668_v42  ;;  %v2240_v42 = vsub.f32 %v4739_v22, %v5243_v11 }
 0x15d   : > { %2072 = vmatpush.msra.mxu1 %v4527_v20  ;;  %v4691_v20 = vand.u32 4294901760, %v4381_v19  ;;  %v857_v28 = vadd.f32 %v4635_v18, %v818_v36  ;;  %vm3135_vm12 = vcmask 1040384  }
 0x15f   : > { %v4682_v45 = vpop.f32.mrf.mxu3  ;;  %2074 = vmatpush.msra.mxu1 %v4534_v31  ;;  %v897_v39 = vpop.f32.mrf.mxu0  ;;  %v4696_v31 = vand.u32 4294901760, %v4383_v5  ;;  %v4719_v32 = vsub.f32 %v4381_v19, %v4691_v20  ;;  %v2909_v19 = vsel %vm4707_vm14, 1.0, %v2893_v16 }
 0x160   : > { %1715 = vmatmul.f32.gmra.mxu0 %v4044_v25  ;;  %1760 = vmatmul.f32.gmra.mxu1 %v3804_v46  ;;  %v926_v30 = vpop.f32.mrf.mxu1  ;;  %v898_v49 = vadd.f32 %v897_v39, %v857_v28  ;;  %v4756_v39 = vmul.f32 %v4624_v4, %v2909_v19 }
 0x161   : > { %1843 = vmatmul.f32.gmra.mxu3 %v3984_v63  ;;  %v4688_v29 = vpop.f32.mrf.mxu2  ;;  %v927_v27 = vadd.f32 %v926_v30, %v894_v50  ;;  %v4730_v34 = vsub.f32 %v4383_v5, %v4696_v31  ;;  %v2227_v43 = vand.u32 4294901760, %v4719_v32  ;;  %v4751_v50 = vmul.f32 %v4626_v17, %v2901_v15 }
 0x163   : > { %1804 = vmatmul.f32.gmra.mxu2 %v3935_v52  ;;  %v2952_v13 = vmul.f32 %v4633_v61, %v927_v27  ;;  %v2668_v61 = vperm.slane %v4414_v59, 2  ;;  %v5244_v57 = vand.u32 4294901760, %v4730_v34  ;;  %v2228_v27 = vsub.f32 %v4719_v32, %v2227_v43 }
 0x164   : > { %v3023_v37 = vadd.f32 %v4756_v39, %v4751_v50 }
 0x165   : > { %v2960_v2 = vadd.f32 %v2952_v13, %v2944_v10  ;;  %v4759_v48 = vsub.f32 %v2668_v61, %v4442_v60  ;;  %v4764_v30 = vsub.f32 %v2668_v61, %v4401_v51  ;;  %v2234_v26 = vsub.f32 %v4730_v34, %v5244_v57 }
 0x166   : > { %v2229_v23 = vand.u32 4294901760, %v2228_v27  ;;  %v4794_v61 = vand.u32 4294901760, %v4453_v58 }
 0x167   : > { %v4732_v6 = vpop.f32.mrf.mxu3  ;;  %v2961_v54 = vrot.slane %v2960_v2, 4  ;;  %v1054_v18 = vpop.f32.mrf.mxu0  ;;  %v5241_v13 = vand.u32 2147483647, %v4764_v30  ;;  %v5240_v16 = vand.u32 2147483647, %v4759_v48 }
 0x168   : > { %1876 = vmatmul.f32.vlgmr.msrb.gmra.mxu0 %v3698_v41  ;;  %1764 = vmatmul.f32.gmra.mxu1 %v3889_v33  ;;  %v930_v5 = vpop.f32.mrf.mxu1  ;;  %v1055_v28 = vadd.f32 %v1054_v18, %v1017_v47  ;;  %v2235_v18 = vand.u32 4294901760, %v2234_v26  ;;  %v2241_v47 = vand.u32 4294901760, %v2240_v42  ;;  %v4812_v26 = vsub.f32 %v4453_v58, %v4794_v61 }
 0x169   : > { %2003 = vmatmul.f32.vlgmr.msrb.gmra.mxu3 %v3698_v41  ;;  %v4743_v24 = vpop.f32.mrf.mxu2  ;;  %v2962_v62 = vadd.f32 %v2961_v54, %v2960_v2  ;;  %2181 = vmatpush.msrb.mxu0 %v4691_v20  ;;  %v931_v38 = vadd.f32 %v930_v5, %v898_v49  ;;  %v2246_v49 = vsub.f32 %v4748_v56, %v5242_v9  ;;  %v3024_v54 = vrot.slane %v3023_v37, 4 }
 0x16a   : > { %2315 = vmatpush.msrb.mxu3 %v4691_v20  ;;  %v4824_v58 = vand.u32 4294901760, %v4508_v40 }
 0x16b   : > { %1946 = vmatmul.f32.vlgmr.msrb.gmra.mxu2 %v3812_v1  ;;  %v2963_v12 = vrot.slane %v2962_v62, 2  ;;  %2183 = vmatpush.msrb.mxu0 %v4696_v31  ;;  %v3072_v36 = vmul.f32 %v3022_v35, %v931_v38  ;;  %v2754_v35 = vmin.f32 %v5241_v13, %v5240_v16  ;;  %v3025_v16 = vadd.f32 %v3024_v54, %v3023_v37 }
 0x16c   : > { %2276 = vmatpush.msrb.mxu2 %v4719_v32  ;;  %2317 = vmatpush.msrb.mxu3 %v4696_v31  ;;  %v1021_v13 = vadd.f32 %v4682_v45, %v4688_v29  ;;  %v2474_v29 = vand.u32 4294901760, %v4812_v26  ;;  %v4841_v54 = vsub.f32 %v4508_v40, %v4824_v58 }
 0x16d   : > { %2185 = vmatpush.msrb.mxu0 %v4714_v53  ;;  %3380 = vrcp.f32 %v3072_v36  ;;  %v2964_v0 = vadd.f32 %v2963_v12, %v2962_v62  ;;  %v4808_v12 = vand.u32 4294901760, %v4455_v21  ;;  %v2755_v57 = vrot.slane %v2754_v35, 4 }
 0x16e   : > { %2279 = vmatpush.msrb.mxu2 %v4730_v34  ;;  %2319 = vmatpush.msrb.mxu3 %v4714_v53  ;;  %3382 = vrcp.f32 %v4759_v48 }
 0x16f   : > { %v1169_v10 = vpop.f32.mrf.mxu3  ;;  %2187 = vmatpush.msrb.mxu0 %v4722_v44  ;;  %v2965_v38 = vrot.slane %v2964_v0, 1  ;;  %v4821_v42 = vsub.f32 %v4455_v21, %v4808_v12  ;;  %3384 = vrcp.f32 %v4764_v30 }
 0x170   : > { %2282 = vmatpush.msrb.mxu2 %v4739_v22  ;;  %2321 = vmatpush.msrb.mxu3 %v4722_v44 }
 0x171   : > { %1880 = vmatmul.f32.gmra.mxu0 %v3804_v46  ;;  %v1059_v2 = vpop.f32.mrf.mxu0  ;;  %v1136_v15 = vpop.f32.mrf.mxu2  ;;  %1909 = vmatmul.f32.vlgmr.msrb.gmra.mxu1 %v3698_v41 }
 0x172   : > { %2007 = vmatmul.f32.gmra.mxu3 %v3804_v46  ;;  %v1091_v19 = vpop.f32.mrf.mxu1  ;;  %2230 = vmatpush.msrb.mxu1 %v2229_v23 }
 0x173   : > { %2285 = vmatpush.msrb.mxu2 %v4748_v56  ;;  %v1092_v5 = vadd.f32 %v1091_v19, %v1055_v28  ;;  %v3381_v62 = vpop.eup %3380  ;;  %v2247_v28 = vand.u32 4294901760, %v2246_v49  ;;  %v4815_v19 = vand.u32 4294901760, %v4463_v8  ;;  %v1060_v49 = vadd.f32 %v1059_v2, %v1021_v13 }
 0x174   : > { %1954 = vmatmul.f32.gmra.mxu2 %v3975_v14  ;;  %v3088_v27 = vmul.f32 %v3381_v62, %v3072_v36  ;;  %2236 = vmatpush.msrb.mxu1 %v2235_v18  ;;  %v2966_v36 = vadd.f32 %v2965_v38, %v2964_v0  ;;  %v3026_v2 = vrot.slane %v3025_v16, 2 }
 0x175   : > { %v1137_v23 = vadd.f32 %v1136_v15, %v1092_v5  ;;  %v4833_v0 = vsub.f32 %v4463_v8, %v4815_v19  ;;  %v2475_v8 = vsub.f32 %v4812_v26, %v2474_v29 }
 0x176   : > { %v3096_v9 = vsub.f32 2.0, %v3088_v27  ;;  %2242 = vmatpush.msrb.mxu1 %v2241_v47  ;;  %v3027_v38 = vadd.f32 %v3026_v2, %v3025_v16  ;;  %v2492_v47 = vand.u32 4294901760, %v4841_v54 }
 0x177   : > { %v1170_v11 = vadd.f32 %v1169_v10, %v1137_v23 }
 0x178   : > { %v1173_v18 = vpop.f32.mrf.mxu3  ;;  %v3104_v15 = vmul.f32 %v3381_v62, %v3096_v9  ;;  %2248 = vmatpush.msrb.mxu1 %v2247_v28  ;;  %v2486_v62 = vand.u32 4294901760, %v4833_v0 }
 0x179   : > { %v2945_v37 = vmul.f32 %v4751_v50, %v1170_v11  ;;  %1884 = vmatmul.f32.gmra.mxu0 %v3889_v33  ;;  %v1064_v45 = vpop.f32.mrf.mxu0  ;;  %1913 = vmatmul.f32.gmra.mxu1 %v3804_v46  ;;  %v2756_v50 = vmin.f32 %v2754_v35, %v2755_v57  ;;  %v2480_v11 = vand.u32 4294901760, %v4821_v42  ;;  %v1025_v57 = vadd.f32 %v4732_v6, %v4743_v24 }
 0x17a   : > { %2011 = vmatmul.f32.gmra.mxu3 %v3889_v33  ;;  %v1097_v10 = vpop.f32.mrf.mxu1  ;;  %v1140_v21 = vpop.f32.mrf.mxu2  ;;  %v4835_v9 = vmul.f32 %v3104_v15, %v2966_v36  ;;  %v2476_v15 = vand.u32 4294901760, %v2475_v8  ;;  %v2487_v6 = vsub.f32 %v4833_v0, %v2486_v62  ;;  %v2669_v8 = vperm.slane %v4414_v59, 3 }
 0x17b   : > { %v1098_v13 = vadd.f32 %v1097_v10, %v1060_v49  ;;  %v2757_v27 = vrot.slane %v2756_v50, 2  ;;  %v2481_v40 = vsub.f32 %v4821_v42, %v2480_v11  ;;  %v1065_v28 = vadd.f32 %v1064_v45, %v1025_v57  ;;  %v3383_v10 = vpop.eup %3382 }
 0x17c   : > { %1962 = vmatmul.f32.gmra.mxu2 %v4044_v25  ;;  %v3028_v45 = vrot.slane %v3027_v38, 1 }
 0x17d   : > { %v1141_v5 = vadd.f32 %v1140_v21, %v1098_v13  ;;  %v2758_v13 = vmin.f32 %v2756_v50, %v2757_v27  ;;  %v2482_v2 = vand.u32 4294901760, %v2481_v40  ;;  %v2830_v50 = vmul.f32 %v3383_v10, %v4759_v48 }
 0x17e   : > { %v5324_v40 = vand.u32 4294901760, %v4739_v22  ;;  %v4884_v22 = vsub.f32 %v2669_v8, %v4401_v51 }
 0x17f   : > { %v1174_v35 = vadd.f32 %v1173_v18, %v1141_v5  ;;  %v3385_v18 = vpop.eup %3384  ;;  %v2493_v5 = vsub.f32 %v4841_v54, %v2492_v47 }
 0x180   : > { %v1177_v23 = vpop.f32.mrf.mxu3 }
 0x181   : > { %v2953_v36 = vmul.f32 %v4756_v39, %v1174_v35  ;;  %2041 = vmatmul.f32.vlgmr.msra.gmra.mxu0 %v3727_v55  ;;  %v1206_v49 = vpop.f32.mrf.mxu0  ;;  %1917 = vmatmul.f32.gmra.mxu1 %v3889_v33  ;;  %v5323_v35 = vand.u32 4294901760, %v4730_v34  ;;  %v2494_v34 = vand.u32 4294901760, %v2493_v5 }
 0x182   : > { %2156 = vmatmul.f32.vlgmr.msra.gmra.mxu3 %v3698_v41  ;;  %v1103_v24 = vpop.f32.mrf.mxu1  ;;  %v1144_v16 = vpop.f32.mrf.mxu2  ;;  %2356 = vmatpush.msra.mxu0 %v2227_v43  ;;  %v2488_v43 = vand.u32 4294901760, %v2487_v6  ;;  %v5325_v6 = vand.u32 4294901760, %v4748_v56 }
 0x183   : > { %v2967_v21 = vadd.f32 %v2953_v36, %v2945_v37  ;;  %2477 = vmatpush.msra.mxu3 %v2476_v15  ;;  %v1104_v39 = vadd.f32 %v1103_v24, %v1065_v28  ;;  %v2822_v37 = vmul.f32 %v3385_v18, %v4764_v30  ;;  %v3029_v28 = vadd.f32 %v3028_v45, %v3027_v38 }
 0x184   : > { %2123 = vmatmul.f32.vlgmr.msra.gmra.mxu2 %v3698_v41  ;;  %2360 = vmatpush.msra.mxu0 %v5323_v35  ;;  %v2759_v36 = vrot.slane %v2758_v13, 1  ;;  %v4878_v24 = vsub.f32 %v2669_v8, %v4442_v60  ;;  %v2711_v8 = vand.u32 2147483647, %v4884_v22 }
 0x185   : > { %v2968_v57 = vrot.slane %v2967_v21, 4  ;;  %2428 = vmatpush.msra.mxu2 %v4794_v61  ;;  %v1145_v32 = vadd.f32 %v1144_v16, %v1104_v39  ;;  %2483 = vmatpush.msra.mxu3 %v2482_v2  ;;  %v2838_v39 = vsub.f32 2.0, %v2822_v37  ;;  %v2846_v2 = vsub.f32 2.0, %v2830_v50 }
 0x186   : > { %2364 = vmatpush.msra.mxu0 %v5324_v40  ;;  %v2760_v45 = vmin.f32 %v2758_v13, %v2759_v36  ;;  %vm4963_vm3 = vcmp.lt.f32.partialorder %v2711_v8, 1e-14 }
 0x187   : > { %v2969_v27 = vadd.f32 %v2968_v57, %v2967_v21  ;;  %2430 = vmatpush.msra.mxu2 %v4808_v12  ;;  %v1178_v59 = vadd.f32 %v1177_v23, %v1145_v32  ;;  %2489 = vmatpush.msra.mxu3 %v2488_v43  ;;  %v2719_v57 = vand.u32 2147483647, %v4878_v24  ;;  %v2854_v43 = vmul.f32 %v3385_v18, %v2838_v39 }
 0x188   : > { %v1338_v15 = vpop.f32.mrf.mxu3  ;;  %2368 = vmatpush.msra.mxu0 %v5325_v6  ;;  %vm2798_vm15 = vcmp.lt.f32.partialorder %v2760_v45, 1e-14  ;;  %v2862_v37 = vmul.f32 %v3383_v10, %v2846_v2  ;;  %v5326_v18 = vand.u32 2147483647, %v4764_v30 }
 0x189   : > { %2432 = vmatpush.msra.mxu2 %v4815_v19  ;;  %v3073_v16 = vmul.f32 %v3029_v28, %v1178_v59  ;;  %v2970_v21 = vrot.slane %v2969_v27, 2  ;;  %2495 = vmatpush.msra.mxu3 %v2494_v34  ;;  %v5330_v34 = vand.u32 2147483647, %v4759_v48  ;;  %vm4969_vm4 = vcmp.lt.f32.partialorder %v2719_v57, 1e-14 }
 0x18a   : > { %2046 = vmatmul.f32.gmra.mxu0 %v3832_v3  ;;  %v1214_v38 = vpop.f32.mrf.mxu0  ;;  %v1301_v23 = vpop.f32.mrf.mxu2  ;;  %2078 = vmatmul.f32.vlgmr.msra.gmra.mxu1 %v3754_v7  ;;  %vm4904_vm0 = vcmp.lt.f32.partialorder %v5326_v18, 1e-14 }
 0x18b   : > { %3386 = vrcp.f32 %v3073_v16  ;;  %2160 = vmatmul.f32.gmra.mxu3 %v3804_v46  ;;  %v1263_v56 = vpop.f32.mrf.mxu1  ;;  %2395 = vmatpush.msra.mxu1 %v4691_v20  ;;  %v2971_v35 = vadd.f32 %v2970_v21, %v2969_v27  ;;  %v5329_v27 = vld [vmem:[#allocation17_spill] sm:$0xff]  ;;  %vm2734_vm1 = vcmp.lt.f32.partialorder %v5330_v34, 1e-14 }
 0x18c   : > { %2434 = vmatpush.msra.mxu2 %v4824_v58  ;;  %v1264_v5 = vadd.f32 %v1263_v56, %v1206_v49  ;;  %v2761_v49 = vmin.f32 %v2711_v8, %v2719_v57  ;;  %3388 = vrcp.f32 %v4884_v22 }
 0x18d   : > { %2127 = vmatmul.f32.gmra.mxu2 %v3804_v46  ;;  %2397 = vmatpush.msra.mxu1 %v4696_v31  ;;  %v2972_v40 = vrot.slane %v2971_v35, 1  ;;  %3390 = vrcp.f32 %v4878_v24 }
 0x18e   : > { %v1302_v32 = vadd.f32 %v1301_v23, %v1264_v5 }
 0x18f   : > { %2399 = vmatpush.msra.mxu1 %v4714_v53  ;;  %v2886_v53 = vsel %vm2798_vm15, 0.0, %v2854_v43  ;;  %v2973_v21 = vadd.f32 %v2972_v40, %v2971_v35 }
 0x190   : > { %v1339_v13 = vadd.f32 %v1338_v15, %v1302_v32  ;;  %v2902_v30 = vsel %vm4904_vm0, 1.0, %v2886_v53 }
 0x191   : > { %v3387_v20 = vpop.eup %3386  ;;  %v1344_v50 = vpop.f32.mrf.mxu3  ;;  %2401 = vmatpush.msra.mxu1 %v4722_v44  ;;  %v2894_v44 = vsel %vm2798_vm15, 0.0, %v2862_v37  ;;  %v2930_v48 = vmul.f32 %v4626_v17, %v2902_v30 }
 0x192   : > { %v3089_v59 = vmul.f32 %v3387_v20, %v3073_v16  ;;  %2051 = vmatmul.f32.gmra.mxu0 %v3935_v52  ;;  %v1222_v31 = vpop.f32.mrf.mxu0  ;;  %2084 = vmatmul.f32.gmra.mxu1 %v5329_v27  ;;  %v2762_v16 = vrot.slane %v2761_v49, 4  ;;  %v2910_v56 = vsel %vm2734_vm1, 1.0, %v2894_v44 }
 0x193   : > { %2164 = vmatmul.f32.gmra.mxu3 %v3889_v33  ;;  %v1267_v28 = vpop.f32.mrf.mxu1  ;;  %v1306_v36 = vpop.f32.mrf.mxu2  ;;  %v4921_v45 = vmul.f32 %v4624_v4, %v2910_v56 }
 0x194   : > { %v3097_v15 = vsub.f32 2.0, %v3089_v59  ;;  %v1268_v6 = vadd.f32 %v1267_v28, %v1214_v38  ;;  %v2763_v38 = vmin.f32 %v2761_v49, %v2762_v16 }
 0x195   : > { %2131 = vmatmul.f32.gmra.mxu2 %v3889_v33  ;;  %v3030_v49 = vadd.f32 %v4921_v45, %v2930_v48 }
 0x196   : > { %v3105_v23 = vmul.f32 %v3387_v20, %v3097_v15  ;;  %v1307_v39 = vadd.f32 %v1306_v36, %v1268_v6  ;;  %v2764_v40 = vrot.slane %v2763_v38, 2 }
 0x197   : > { %v3031_v53 = vrot.slane %v3030_v49, 4 }
 0x198   : > { %v4917_v2 = vmul.f32 %v3105_v23, %v2973_v21  ;;  %v1345_v5 = vadd.f32 %v1344_v50, %v1307_v39  ;;  %v2765_v28 = vmin.f32 %v2763_v38, %v2764_v40 }
 0x199   : > { %v1350_v32 = vpop.f32.mrf.mxu3 }
 0x19a   : > { %2193 = vmatmul.f32.vlgmr.msrb.gmra.mxu0 %v3812_v1  ;;  %v1383_v43 = vpop.f32.mrf.mxu0  ;;  %2090 = vmatmul.f32.gmra.mxu1 %v3984_v63  ;;  %v2766_v15 = vrot.slane %v2765_v28, 1 }
 0x19b   : > { %2325 = vmatmul.f32.vlgmr.msrb.gmra.mxu3 %v3754_v7  ;;  %v1271_v35 = vpop.f32.mrf.mxu1  ;;  %v1384_v37 = vadd.f32 %v1383_v43, %v1339_v13  ;;  %v1311_v20 = vpop.f32.mrf.mxu2  ;;  %2523 = vmatpush.msrb.mxu0 %v4812_v26 }
 0x19c   : > { %2642 = vmatpush.msrb.mxu3 %v4794_v61  ;;  %v1272_v50 = vadd.f32 %v1271_v35, %v1222_v31  ;;  %v3389_v13 = vpop.eup %3388  ;;  %v2767_v16 = vmin.f32 %v2765_v28, %v2766_v15 }
 0x19d   : > { %2288 = vmatmul.f32.vlgmr.msrb.gmra.mxu2 %v3727_v55  ;;  %2526 = vmatpush.msrb.mxu0 %v4821_v42  ;;  %v3391_v18 = vpop.eup %3390  ;;  %v2823_v42 = vmul.f32 %v3389_v13, %v4884_v22 }
 0x19e   : > { %2603 = vmatpush.msrb.mxu2 %v2474_v29  ;;  %v1312_v59 = vadd.f32 %v1311_v20, %v1272_v50  ;;  %2644 = vmatpush.msrb.mxu3 %v4808_v12  ;;  %v2831_v44 = vmul.f32 %v3391_v18, %v4878_v24  ;;  %vm2799_vm2 = vcmp.lt.f32.partialorder %v2767_v16, 1e-14 }
 0x19f   : > { %2529 = vmatpush.msrb.mxu0 %v4833_v0  ;;  %v2839_v30 = vsub.f32 2.0, %v2823_v42 }
 0x1a0   : > { %2607 = vmatpush.msrb.mxu2 %v2480_v11  ;;  %v1351_v31 = vadd.f32 %v1350_v32, %v1312_v59  ;;  %2646 = vmatpush.msrb.mxu3 %v4815_v19 }
 0x1a1   : > { %v1510_v10 = vpop.f32.mrf.mxu3  ;;  %2532 = vmatpush.msrb.mxu0 %v4841_v54  ;;  %v2847_v54 = vsub.f32 2.0, %v2831_v44 }
 0x1a2   : > { %2611 = vmatpush.msrb.mxu2 %v2486_v62  ;;  %2648 = vmatpush.msrb.mxu3 %v4824_v58  ;;  %v3032_v62 = vadd.f32 %v3031_v53, %v3030_v49  ;;  %v4974_v49 = vld [vmem:[%s3637_s13 + $0x1] ss:$2 sm:$0xff]  ;;  %s3465_s13 = sshra.s32 %s3167_s11, 4  ;;  %s3466_s13 = int_to_ptr.hbm [resolvable:$true] %s3465_s13 }
 0x1a3   : > { %2201 = vmatmul.f32.gmra.mxu0 %v3975_v14  ;;  %v1387_v26 = vpop.f32.mrf.mxu0  ;;  %v1453_v29 = vpop.f32.mrf.mxu2  ;;  %2250 = vmatmul.f32.vlgmr.msrb.gmra.mxu1 %v3698_v41  ;;  %s3467_s8 = scalar_lea.hbm %s3466_s13, 8  ;;  %p3472_p3 = scmp.lt.s32.totalorder %s3466_s13, %s5213_s5 }
 0x1a4   : > { %2615 = vmatpush.msrb.mxu2 %v2492_v47  ;;  %v1388_v11 = vadd.f32 %v1387_v26, %v1345_v5  ;;  %v1416_v36 = vpop.f32.mrf.mxu1  ;;  %v1511_v34 = vadd.f32 %v1510_v10, %v1453_v29  ;;  %2562 = vmatpush.msrb.mxu1 %v4794_v61  ;;  %v3033_v47 = vrot.slane %v3032_v62, 2  ;;  %v2863_v5 = vmul.f32 %v3391_v18, %v2847_v54  ;;  %p3468_p0 = scmp.ne.s32.totalorder %s3466_s13, %s3467_s8  ;;  %p3473_p4 = scmp.lt.s32.totalorder %s3471_s15, %s3467_s8 }
 0x1a5   : > { %2293 = vmatmul.f32.gmra.mxu2 %v3832_v3  ;;  %v1417_v0 = vadd.f32 %v1416_v36, %v1384_v37  ;;  %2331 = vmatmul.f32.gmra.mxu3 %v5329_v27 }
 0x1a6   : > { %2564 = vmatpush.msrb.mxu1 %v4808_v12  ;;  %v2855_v12 = vmul.f32 %v3389_v13, %v2839_v30  ;;  %v2895_v37 = vsel %vm2799_vm2, 0.0, %v2863_v5  ;;  %p3469_p1 = pnand %p3468_p0, %p3591_p5  ;;  %p3474_p7 = por %p3473_p4, %p3472_p3 }
 0x1a7   : > { %v2946_v6 = vmul.f32 %v2930_v48, %v1417_v0  ;;  %v3034_v48 = vadd.f32 %v3033_v47, %v3032_v62  ;;  %v2911_v24 = vsel %vm4969_vm4, 1.0, %v2895_v37  ;;  %vm3141_vm4 = vcmask 1044484  }
 0x1a8   : > { %2566 = vmatpush.msrb.mxu1 %v4815_v19  ;;  %v2887_v43 = vsel %vm2799_vm2, 0.0, %v2855_v12  ;;  %v2939_v42 = vmul.f32 %v4624_v4, %v2911_v24  ;;  %vm3137_vm2 = vcmask 1042434   ;;  %p3470_p2 = pneg %p3469_p1 }
 0x1a9   : > { %v3035_v50 = vrot.slane %v3034_v48, 1  ;;  %v2903_v59 = vsel %vm4963_vm3, 1.0, %v2887_v43  ;;  %vm3139_vm3 = vcmask 1041408  }
 0x1aa   : > { %v1514_v21 = vpop.f32.mrf.mxu3  ;;  %2568 = vmatpush.msrb.mxu1 %v4824_v58  ;;  %v2931_v29 = vmul.f32 %v4626_v17, %v2903_v59  ;;  %p3475_p8 = pnand %p3474_p7, %p3470_p2 }
 0x1ab   : > { %2209 = vmatmul.f32.gmra.mxu0 %v4044_v25  ;;  %v1391_v61 = vpop.f32.mrf.mxu0  ;;  %2254 = vmatmul.f32.gmra.mxu1 %v3804_v46  ;;  %v3036_v53 = vadd.f32 %v3035_v50, %v3034_v48 }
 0x1ac   : > { %v1392_v23 = vadd.f32 %v1391_v61, %v1351_v31  ;;  %v1420_v39 = vpop.f32.mrf.mxu1  ;;  %v1461_v56 = vpop.f32.mrf.mxu2 }
 0x1ad   : > { %2298 = vmatmul.f32.gmra.mxu2 %v3935_v52  ;;  %v1421_v32 = vadd.f32 %v1420_v39, %v1388_v11  ;;  %v1515_v19 = vadd.f32 %v1514_v21, %v1461_v56  ;;  %2337 = vmatmul.f32.gmra.mxu3 %v3984_v63 }
 0x1af   : > { %v2954_v58 = vmul.f32 %v4921_v45, %v1421_v32  ;;  %v2670_v45 = vperm.slane %v4974_v49, 4 }
 0x1b1   : > { %v2974_v20 = vadd.f32 %v2954_v58, %v2946_v6  ;;  %v4985_v26 = vsub.f32 %v2670_v45, %v4442_v60  ;;  %v4991_v11 = vsub.f32 %v2670_v45, %v4401_v51 }
 0x1b2   : > { %v1518_v40 = vpop.f32.mrf.mxu3 }
 0x1b3   : > { %v2975_v22 = vrot.slane %v2974_v20, 4  ;;  %2370 = vmatmul.f32.vlgmr.msra.gmra.mxu0 %v3698_v41  ;;  %v1548_v8 = vpop.f32.mrf.mxu0  ;;  %2258 = vmatmul.f32.gmra.mxu1 %v3889_v33  ;;  %v2712_v0 = vand.u32 2147483647, %v4991_v11  ;;  %v2720_v62 = vand.u32 2147483647, %v4985_v26 }
 0x1b4   : > { %v1424_v57 = vpop.f32.mrf.mxu1  ;;  %v1549_v13 = vadd.f32 %v1548_v8, %v1511_v34  ;;  %v1469_v31 = vpop.f32.mrf.mxu2 }
 0x1b5   : > { %v2976_v18 = vadd.f32 %v2975_v22, %v2974_v20  ;;  %2440 = vmatmul.f32.vlgmr.msra.gmra.mxu2 %v3812_v1  ;;  %v1425_v10 = vadd.f32 %v1424_v57, %v1392_v23  ;;  %v1519_v28 = vadd.f32 %v1518_v40, %v1469_v31  ;;  %2497 = vmatmul.f32.vlgmr.msra.gmra.mxu3 %v3698_v41  ;;  %vm5039_vm6 = vcmp.lt.f32.partialorder %v2712_v0, 1e-14 }
 0x1b6   : > { %v3037_v1 = vadd.f32 %v2939_v42, %v2931_v29  ;;  %v2768_v61 = vmin.f32 %v2712_v0, %v2720_v62  ;;  %vm2736_vm7 = vcmp.lt.f32.partialorder %v2720_v62, 1e-14 }
 0x1b7   : > { %v3074_v36 = vmul.f32 %v3036_v53, %v1425_v10  ;;  %v2977_v34 = vrot.slane %v2976_v18, 2 }
 0x1b8   : > { %v3038_v21 = vrot.slane %v3037_v1, 4  ;;  %v2769_v58 = vrot.slane %v2768_v61, 4 }
 0x1b9   : > { %3392 = vrcp.f32 %v3074_v36  ;;  %v2978_v15 = vadd.f32 %v2977_v34, %v2976_v18 }
 0x1ba   : > { %v1663_v44 = vpop.f32.mrf.mxu3  ;;  %v3039_v48 = vadd.f32 %v3038_v21, %v3037_v1  ;;  %v2770_v8 = vmin.f32 %v2768_v61, %v2769_v58  ;;  %3394 = vrcp.f32 %v4985_v26 }
 0x1bb   : > { %2374 = vmatmul.f32.gmra.mxu0 %v3804_v46  ;;  %2403 = vmatmul.f32.vlgmr.msra.gmra.mxu1 %v3698_v41  ;;  %v2979_v39 = vrot.slane %v2978_v15, 1  ;;  %3396 = vrcp.f32 %v4991_v11 }
 0x1bc   : > { %v1553_v6 = vpop.f32.mrf.mxu0  ;;  %v1630_v30 = vpop.f32.mrf.mxu2  ;;  %v3040_v22 = vrot.slane %v3039_v48, 2 }
 0x1bd   : > { %2448 = vmatmul.f32.gmra.mxu2 %v3975_v14  ;;  %v1554_v54 = vadd.f32 %v1553_v6, %v1515_v19  ;;  %v1585_v47 = vpop.f32.mrf.mxu1  ;;  %2501 = vmatmul.f32.gmra.mxu3 %v3804_v46  ;;  %v2980_v19 = vadd.f32 %v2979_v39, %v2978_v15  ;;  %v2671_v15 = vperm.slane %v4974_v49, 5 }
 0x1be   : > { %v1586_v16 = vadd.f32 %v1585_v47, %v1549_v13  ;;  %v3041_v57 = vadd.f32 %v3040_v22, %v3039_v48  ;;  %v2771_v13 = vrot.slane %v2770_v8, 2 }
 0x1bf   : > { %v3393_v23 = vpop.eup %3392  ;;  %v5024_v39 = vsub.f32 %v2671_v15, %v4401_v51 }
 0x1c0   : > { %v3090_v56 = vmul.f32 %v3393_v23, %v3074_v36  ;;  %v1631_v12 = vadd.f32 %v1630_v30, %v1586_v16  ;;  %v3395_v10 = vpop.eup %3394  ;;  %v2772_v1 = vmin.f32 %v2770_v8, %v2771_v13 }
 0x1c1   : > { %v2832_v30 = vmul.f32 %v3395_v10, %v4985_v26 }
 0x1c2   : > { %v3098_v5 = vsub.f32 2.0, %v3090_v56  ;;  %v1664_v32 = vadd.f32 %v1663_v44, %v1631_v12  ;;  %v3042_v44 = vrot.slane %v3041_v57, 1  ;;  %v2773_v21 = vrot.slane %v2772_v1, 1 }
 0x1c3   : > { %2378 = vmatmul.f32.gmra.mxu0 %v3889_v33  ;;  %v1667_v14 = vpop.f32.mrf.mxu3  ;;  %2407 = vmatmul.f32.gmra.mxu1 %v3804_v46  ;;  %v2848_v58 = vsub.f32 2.0, %v2832_v30 }
 0x1c4   : > { %v3106_v38 = vmul.f32 %v3393_v23, %v3098_v5  ;;  %v2947_v43 = vmul.f32 %v2931_v29, %v1664_v32  ;;  %v1558_v35 = vpop.f32.mrf.mxu0  ;;  %v3397_v29 = vpop.eup %3396  ;;  %v3043_v16 = vadd.f32 %v3042_v44, %v3041_v57  ;;  %v5020_v23 = vsub.f32 %v2671_v15, %v4442_v60 }
 0x1c5   : > { %2456 = vmatmul.f32.gmra.mxu2 %v4044_v25  ;;  %v1559_v37 = vadd.f32 %v1558_v35, %v1519_v28  ;;  %v1591_v20 = vpop.f32.mrf.mxu1  ;;  %v1634_v50 = vpop.f32.mrf.mxu2  ;;  %2505 = vmatmul.f32.gmra.mxu3 %v3889_v33 }
 0x1c6   : > { %v5006_v45 = vmul.f32 %v3106_v38, %v2980_v19  ;;  %v1592_v40 = vadd.f32 %v1591_v20, %v1554_v54  ;;  %v2713_v19 = vand.u32 2147483647, %v5024_v39 }
 0x1c8   : > { %v1635_v59 = vadd.f32 %v1634_v50, %v1592_v40  ;;  %vm5061_vm9 = vcmp.lt.f32.partialorder %v2713_v19, 1e-14 }
 0x1ca   : > { %v1668_v24 = vadd.f32 %v1667_v14, %v1635_v59 }
 0x1cb   : > { %2535 = vmatmul.f32.vlgmr.msrb.gmra.mxu0 %v3727_v55  ;;  %v1671_v25 = vpop.f32.mrf.mxu3  ;;  %2411 = vmatmul.f32.gmra.mxu1 %v3889_v33 }
 0x1cc   : > { %v2955_v31 = vmul.f32 %v2939_v42, %v1668_v24  ;;  %v1700_v18 = vpop.f32.mrf.mxu0  ;;  %v2824_v42 = vmul.f32 %v3397_v29, %v4991_v11 }
 0x1cd   : > { %2617 = vmatmul.f32.vlgmr.msrb.gmra.mxu2 %v3698_v41  ;;  %v1597_v53 = vpop.f32.mrf.mxu1  ;;  %v1638_v28 = vpop.f32.mrf.mxu2  ;;  %2650 = vmatmul.f32.vlgmr.msrb.gmra.mxu3 %v3698_v41 }
 0x1ce   : > { %v2981_v36 = vadd.f32 %v2955_v31, %v2947_v43  ;;  %v1598_v34 = vadd.f32 %v1597_v53, %v1559_v37  ;;  %v2840_v32 = vsub.f32 2.0, %v2824_v42  ;;  %v2864_v37 = vmul.f32 %v3395_v10, %v2848_v58 }
 0x1d0   : > { %v2982_v55 = vrot.slane %v2981_v36, 4  ;;  %v1639_v6 = vadd.f32 %v1638_v28, %v1598_v34  ;;  %v2856_v35 = vmul.f32 %v3397_v29, %v2840_v32 }
 0x1d2   : > { %v2983_v54 = vadd.f32 %v2982_v55, %v2981_v36  ;;  %v1672_v47 = vadd.f32 %v1671_v25, %v1639_v6 }
 0x1d3   : > { %2540 = vmatmul.f32.gmra.mxu0 %v3832_v3  ;;  %v1832_v61 = vpop.f32.mrf.mxu3  ;;  %2572 = vmatmul.f32.vlgmr.msrb.gmra.mxu1 %v3754_v7  ;;  %v2774_v3 = vmin.f32 %v2772_v1, %v2773_v21  ;;  %v2721_v7 = vand.u32 2147483647, %v5020_v23 }
 0x1d4   : > { %v3075_v41 = vmul.f32 %v3043_v16, %v1672_v47  ;;  %v2984_v56 = vrot.slane %v2983_v54, 2 }
 0x1d5   : > { %2621 = vmatmul.f32.gmra.mxu2 %v3804_v46  ;;  %v1708_v12 = vpop.f32.mrf.mxu0  ;;  %v1795_v5 = vpop.f32.mrf.mxu2  ;;  %2654 = vmatmul.f32.gmra.mxu3 %v3804_v46  ;;  %vm2800_vm5 = vcmp.lt.f32.partialorder %v2774_v3, 1e-14  ;;  %v2775_v46 = vmin.f32 %v2713_v19, %v2721_v7  ;;  %vm5067_vm10 = vcmp.lt.f32.partialorder %v2721_v7, 1e-14 }
 0x1d6   : > { %3398 = vrcp.f32 %v3075_v41  ;;  %v1757_v48 = vpop.f32.mrf.mxu1  ;;  %v2985_v38 = vadd.f32 %v2984_v56, %v2983_v54  ;;  %v2896_v13 = vsel %vm2800_vm5, 0.0, %v2864_v37 }
 0x1d7   : > { %v1758_v14 = vadd.f32 %v1757_v48, %v1700_v18  ;;  %v2776_v0 = vrot.slane %v2775_v46, 4  ;;  %v2912_v28 = vsel %vm2736_vm7, 1.0, %v2896_v13  ;;  %3400 = vrcp.f32 %v5024_v39 }
 0x1d8   : > { %v2986_v22 = vrot.slane %v2985_v38, 1  ;;  %v2940_v62 = vmul.f32 %v4624_v4, %v2912_v28  ;;  %3402 = vrcp.f32 %v5020_v23  ;;  %vm3147_vm7 = vcmask 1043456  }
 0x1d9   : > { %v1796_v43 = vadd.f32 %v1795_v5, %v1758_v14  ;;  %v2777_v34 = vmin.f32 %v2775_v46, %v2776_v0 }
 0x1da   : > { %v2987_v18 = vadd.f32 %v2986_v22, %v2985_v38 }
 0x1db   : > { %v1833_v20 = vadd.f32 %v1832_v61, %v1796_v43  ;;  %2545 = vmatmul.f32.gmra.mxu0 %v3935_v52  ;;  %2578 = vmatmul.f32.gmra.mxu1 %v5329_v27  ;;  %v2888_v52 = vsel %vm2800_vm5, 0.0, %v2856_v35  ;;  %v2778_v30 = vrot.slane %v2777_v34, 2  ;;  %vm3143_vm5 = vcmask 1046534  }
 0x1dc   : > { %v3399_v50 = vpop.eup %3398  ;;  %v1838_v40 = vpop.f32.mrf.mxu3  ;;  %v2904_v11 = vsel %vm5039_vm6, 1.0, %v2888_v52  ;;  %vm3145_vm6 = vcmask 1045508  }
 0x1dd   : > { %v3091_v8 = vmul.f32 %v3399_v50, %v3075_v41  ;;  %2625 = vmatmul.f32.gmra.mxu2 %v3889_v33  ;;  %v1716_v59 = vpop.f32.mrf.mxu0  ;;  %2658 = vmatmul.f32.gmra.mxu3 %v3889_v33  ;;  %v2932_v26 = vmul.f32 %v4626_v17, %v2904_v11  ;;  %v3401_v47 = vpop.eup %3400  ;;  %v2779_v41 = vmin.f32 %v2777_v34, %v2778_v30 }
 0x1de   : > { %v1761_v27 = vpop.f32.mrf.mxu1  ;;  %v1800_v57 = vpop.f32.mrf.mxu2  ;;  %v2825_v3 = vmul.f32 %v3401_v47, %v5024_v39 }
 0x1df   : > { %v3099_v25 = vsub.f32 2.0, %v3091_v8  ;;  %v1762_v31 = vadd.f32 %v1761_v27, %v1708_v12  ;;  %v3044_v42 = vadd.f32 %v2940_v62, %v2932_v26  ;;  %v3403_v16 = vpop.eup %3402  ;;  %v2780_v43 = vrot.slane %v2779_v41, 1 }
 0x1e0   : > { %v2833_v58 = vmul.f32 %v3403_v16, %v5020_v23  ;;  %v2841_v37 = vsub.f32 2.0, %v2825_v3 }
 0x1e1   : > { %v3107_v10 = vmul.f32 %v3399_v50, %v3099_v25  ;;  %v1801_v53 = vadd.f32 %v1800_v57, %v1762_v31  ;;  %v3045_v61 = vrot.slane %v3044_v42, 4 }
 0x1e2   : > { %v2857_v52 = vmul.f32 %v3401_v47, %v2841_v37 }
 0x1e3   : > { %v5050_v29 = vmul.f32 %v3107_v10, %v2987_v18  ;;  %v1839_v36 = vadd.f32 %v1838_v40, %v1801_v53  ;;  %2584 = vmatmul.f32.gmra.mxu1 %v3984_v63  ;;  %v3046_v38 = vadd.f32 %v3045_v61, %v3044_v42  ;;  %v2781_v40 = vmin.f32 %v2779_v41, %v2780_v43 }
 0x1e4   : > { %v1844_v33 = vpop.f32.mrf.mxu3 }
 0x1e5   : > { %v1877_v44 = vpop.f32.mrf.mxu0  ;;  %v3047_v50 = vrot.slane %v3046_v38, 2  ;;  %vm2801_vm8 = vcmp.lt.f32.partialorder %v2781_v40, 1e-14 }
 0x1e6   : > { %v1765_v1 = vpop.f32.mrf.mxu1  ;;  %v1878_v15 = vadd.f32 %v1877_v44, %v1833_v20  ;;  %v1805_v55 = vpop.f32.mrf.mxu2  ;;  %v2849_v20 = vsub.f32 2.0, %v2833_v58  ;;  %v2889_v0 = vsel %vm2801_vm8, 0.0, %v2857_v52 }
 0x1e7   : > { %v1766_v6 = vadd.f32 %v1765_v1, %v1716_v59  ;;  %v3048_v25 = vadd.f32 %v3047_v50, %v3046_v38  ;;  %v2905_v39 = vsel %vm5061_vm9, 1.0, %v2889_v0 }
 0x1e8   : > { %v2865_v27 = vmul.f32 %v3403_v16, %v2849_v20 }
 0x1e9   : > { %v1806_v54 = vadd.f32 %v1805_v55, %v1766_v6  ;;  %v3049_v28 = vrot.slane %v3048_v25, 1  ;;  %v2933_v55 = vmul.f32 %v4626_v17, %v2905_v39 }
 0x1ea   : > { %v2897_v10 = vsel %vm2801_vm8, 0.0, %v2865_v27 }
 0x1eb   : > { %v1845_v63 = vadd.f32 %v1844_v33, %v1806_v54  ;;  %v2913_v19 = vsel %vm5067_vm10, 1.0, %v2897_v10  ;;  %v3050_v1 = vadd.f32 %v3049_v28, %v3048_v25 }
 0x1ec   : > { %v2004_v21 = vpop.f32.mrf.mxu3  ;;  %v2941_v6 = vmul.f32 %v4624_v4, %v2913_v19 }
 0x1ee   : > { %v1881_v56 = vpop.f32.mrf.mxu0  ;;  %v1947_v12 = vpop.f32.mrf.mxu2  ;;  %v3051_v47 = vadd.f32 %v2941_v6, %v2933_v55 }
 0x1ef   : > { %v1882_v5 = vadd.f32 %v1881_v56, %v1839_v36  ;;  %v1910_v32 = vpop.f32.mrf.mxu1  ;;  %v2005_v48 = vadd.f32 %v2004_v21, %v1947_v12 }
 0x1f0   : > { %v1911_v14 = vadd.f32 %v1910_v32, %v1878_v15  ;;  %v3052_v12 = vrot.slane %v3051_v47, 4  ;;  %v2672_v32 = vperm.slane %v4974_v49, 6 }
 0x1f2   : > { %v2948_v35 = vmul.f32 %v2932_v26, %v1911_v14  ;;  %v3053_v43 = vadd.f32 %v3052_v12, %v3051_v47  ;;  %v5082_v20 = vsub.f32 %v2672_v32, %v4401_v51 }
 0x1f5   : > { %v2008_v46 = vpop.f32.mrf.mxu3 }
 0x1f6   : > { %v1885_v22 = vpop.f32.mrf.mxu0 }
 0x1f7   : > { %v1886_v8 = vadd.f32 %v1885_v22, %v1845_v63  ;;  %v1914_v59 = vpop.f32.mrf.mxu1  ;;  %v1955_v24 = vpop.f32.mrf.mxu2 }
 0x1f8   : > { %v1915_v57 = vadd.f32 %v1914_v59, %v1882_v5  ;;  %v2009_v13 = vadd.f32 %v2008_v46, %v1955_v24 }
 0x1fa   : > { %v2956_v31 = vmul.f32 %v2940_v62, %v1915_v57  ;;  %v3054_v57 = vrot.slane %v3053_v43, 2 }
 0x1fc   : > { %v2988_v53 = vadd.f32 %v2956_v31, %v2948_v35  ;;  %v5079_v35 = vsub.f32 %v2672_v32, %v4442_v60  ;;  %v3055_v0 = vadd.f32 %v3054_v57, %v3053_v43 }
 0x1fd   : > { %v2012_v36 = vpop.f32.mrf.mxu3 }
 0x1fe   : > { %v2989_v33 = vrot.slane %v2988_v53, 4  ;;  %v2042_v26 = vpop.f32.mrf.mxu0  ;;  %v2722_v25 = vand.u32 2147483647, %v5079_v35 }
 0x1ff   : > { %v1918_v62 = vpop.f32.mrf.mxu1  ;;  %v2043_v34 = vadd.f32 %v2042_v26, %v2005_v48  ;;  %v1963_v44 = vpop.f32.mrf.mxu2 }
 0x200   : > { %v2990_v23 = vadd.f32 %v2989_v33, %v2988_v53  ;;  %v1919_v7 = vadd.f32 %v1918_v62, %v1886_v8  ;;  %v2013_v15 = vadd.f32 %v2012_v36, %v1963_v44  ;;  %v2673_v36 = vperm.slane %v4974_v49, 7 }
 0x201   : > { %v3056_v62 = vrot.slane %v3055_v0, 1  ;;  %vm2738_vm14 = vcmp.lt.f32.partialorder %v2722_v25, 1e-14 }
 0x202   : > { %v3076_v42 = vmul.f32 %v3050_v1, %v1919_v7  ;;  %v2991_v30 = vrot.slane %v2990_v23, 2  ;;  %v5096_v7 = vsub.f32 %v2673_v36, %v4442_v60 }
 0x204   : > { %3404 = vrcp.f32 %v3076_v42  ;;  %v2992_v63 = vadd.f32 %v2991_v30, %v2990_v23 }
 0x205   : > { %v2157_v54 = vpop.f32.mrf.mxu3  ;;  %3406 = vrcp.f32 %v5082_v20 }
 0x206   : > { %v2993_v48 = vrot.slane %v2992_v63, 1  ;;  %3408 = vrcp.f32 %v5079_v35 }
 0x207   : > { %v2047_v16 = vpop.f32.mrf.mxu0  ;;  %v2124_v21 = vpop.f32.mrf.mxu2 }
 0x208   : > { %v2048_v61 = vadd.f32 %v2047_v16, %v2009_v13  ;;  %v2079_v41 = vpop.f32.mrf.mxu1  ;;  %v2994_v50 = vadd.f32 %v2993_v48, %v2992_v63  ;;  %v2714_v13 = vand.u32 2147483647, %v5082_v20 }
 0x209   : > { %v2080_v56 = vadd.f32 %v2079_v41, %v2043_v34 }
 0x20a   : > { %v3405_v5 = vpop.eup %3404  ;;  %v2782_v10 = vmin.f32 %v2714_v13, %v2722_v25  ;;  %vm5136_vm13 = vcmp.lt.f32.partialorder %v2714_v13, 1e-14 }
 0x20b   : > { %v3092_v3 = vmul.f32 %v3405_v5, %v3076_v42  ;;  %v2125_v58 = vadd.f32 %v2124_v21, %v2080_v56  ;;  %v3407_v41 = vpop.eup %3406 }
 0x20c   : > { %v2783_v34 = vrot.slane %v2782_v10, 4  ;;  %v3409_v12 = vpop.eup %3408 }
 0x20d   : > { %v3100_v14 = vsub.f32 2.0, %v3092_v3  ;;  %v2158_v38 = vadd.f32 %v2157_v54, %v2125_v58 }
 0x20e   : > { %v2161_v37 = vpop.f32.mrf.mxu3  ;;  %v2784_v42 = vmin.f32 %v2782_v10, %v2783_v34 }
 0x20f   : > { %v3108_v40 = vmul.f32 %v3405_v5, %v3100_v14  ;;  %v2949_v46 = vmul.f32 %v2933_v55, %v2158_v38  ;;  %v2052_v22 = vpop.f32.mrf.mxu0  ;;  %v3057_v55 = vadd.f32 %v3056_v62, %v3055_v0  ;;  %v3128_v0 = vrot.slane %v4917_v2, 7 }
 0x210   : > { %v2053_v8 = vadd.f32 %v2052_v22, %v2013_v15  ;;  %v2085_v59 = vpop.f32.mrf.mxu1  ;;  %v2128_v24 = vpop.f32.mrf.mxu2  ;;  %v2785_v21 = vrot.slane %v2784_v42, 2 }
 0x211   : > { %v5084_v52 = vmul.f32 %v3108_v40, %v2994_v50  ;;  %v2086_v27 = vadd.f32 %v2085_v59, %v2048_v61  ;;  %v2834_v50 = vmul.f32 %v3409_v12, %v5079_v35  ;;  %v5141_v2 = vsel %vm3135_vm12, %v4835_v9, %v3128_v0 }
 0x212   : > { %v2786_v5 = vmin.f32 %v2784_v42, %v2785_v21 }
 0x213   : > { %v2129_v31 = vadd.f32 %v2128_v24, %v2086_v27  ;;  %v2850_v27 = vsub.f32 2.0, %v2834_v50 }
 0x214   : > { %v2787_v22 = vrot.slane %v2786_v5, 1 }
 0x215   : > { %v2162_v11 = vadd.f32 %v2161_v37, %v2129_v31  ;;  %v2826_v37 = vmul.f32 %v3407_v41, %v5082_v20 }
 0x216   : > { %v2165_v18 = vpop.f32.mrf.mxu3 }
 0x217   : > { %v2957_v53 = vmul.f32 %v2941_v6, %v2162_v11  ;;  %v5092_v28 = vpop.f32.mrf.mxu0  ;;  %v5099_v6 = vsub.f32 %v2673_v36, %v4401_v51  ;;  %v2723_v51 = vand.u32 2147483647, %v5096_v7  ;;  %v2842_v24 = vsub.f32 2.0, %v2826_v37 }
 0x218   : > { %v2091_v33 = vpop.f32.mrf.mxu1  ;;  %v2132_v26 = vpop.f32.mrf.mxu2  ;;  %v2788_v11 = vmin.f32 %v2786_v5, %v2787_v22 }
 0x219   : > { %v2995_v39 = vadd.f32 %v2957_v53, %v2949_v46  ;;  %v2092_v19 = vadd.f32 %v2091_v33, %v2053_v8  ;;  %v2715_v16 = vand.u32 2147483647, %v5099_v6  ;;  %v2858_v33 = vmul.f32 %v3407_v41, %v2842_v24 }
 0x21a   : > { %vm2802_vm11 = vcmp.lt.f32.partialorder %v2788_v11, 1e-14  ;;  %vm2739_vm1 = vcmp.lt.f32.partialorder %v2723_v51, 1e-14 }
 0x21b   : > { %v2996_v44 = vrot.slane %v2995_v39, 4  ;;  %v2133_v23 = vadd.f32 %v2132_v26, %v2092_v19  ;;  %v2789_v56 = vmin.f32 %v2715_v16, %v2723_v51  ;;  %v2866_v26 = vmul.f32 %v3409_v12, %v2850_v27 }
 0x21c   : > { %vm2731_vm0 = vcmp.lt.f32.partialorder %v2715_v16, 1e-14 }
 0x21d   : > { %v2997_v1 = vadd.f32 %v2996_v44, %v2995_v39  ;;  %v2166_v15 = vadd.f32 %v2165_v18, %v2133_v23  ;;  %v2790_v40 = vrot.slane %v2789_v56, 4  ;;  %v2890_v44 = vsel %vm2802_vm11, 0.0, %v2858_v33 }
 0x21e   : > { %v5101_v49 = vpop.f32.mrf.mxu3  ;;  %v2898_v23 = vsel %vm2802_vm11, 0.0, %v2866_v26 }
 0x21f   : > { %v3077_v30 = vmul.f32 %v3057_v55, %v2166_v15  ;;  %v2998_v54 = vrot.slane %v2997_v1, 2  ;;  %v2791_v57 = vmin.f32 %v2789_v56, %v2790_v40  ;;  %v2906_v55 = vsel %vm5136_vm13, 1.0, %v2890_v44 }
 0x220   : > { %v5104_v47 = vpop.f32.mrf.mxu0  ;;  %v5106_v63 = vpop.f32.mrf.mxu2  ;;  %v2914_v20 = vsel %vm2738_vm14, 1.0, %v2898_v23 }
 0x221   : > { %3410 = vrcp.f32 %v3077_v30  ;;  %v5109_v60 = vpop.f32.mrf.mxu1  ;;  %v2999_v61 = vadd.f32 %v2998_v54, %v2997_v1  ;;  %v2792_v39 = vrot.slane %v2791_v57, 2  ;;  %v2942_v35 = vmul.f32 %v4624_v4, %v2914_v20 }
 0x222   : > { %3412 = vrcp.f32 %v5099_v6  ;;  %v2252_v0 = vadd.f32 %v5109_v60, %v5092_v28 }
 0x223   : > { %v3000_v48 = vrot.slane %v2999_v61, 1  ;;  %3414 = vrcp.f32 %v5096_v7  ;;  %v2793_v1 = vmin.f32 %v2791_v57, %v2792_v39 }
 0x225   : > { %v3001_v8 = vadd.f32 %v3000_v48, %v2999_v61  ;;  %v2794_v21 = vrot.slane %v2793_v1, 1  ;;  %v5150_v61 = vmul.f32 %v4626_v17, %v2906_v55 }
 0x227   : > { %v3411_v32 = vpop.eup %3410  ;;  %v2795_v56 = vmin.f32 %v2793_v1, %v2794_v21  ;;  %v3058_v12 = vadd.f32 %v2942_v35, %v5150_v61 }
 0x228   : > { %v3093_v3 = vmul.f32 %v3411_v32, %v3077_v30  ;;  %v5117_v58 = vpop.f32.mrf.mxu0  ;;  %v5119_v14 = vpop.f32.mrf.mxu2 }
 0x229   : > { %v2255_v38 = vpop.f32.mrf.mxu1  ;;  %v5121_v43 = vpop.f32.mrf.mxu3  ;;  %vm2803_vm15 = vcmp.lt.f32.partialorder %v2795_v56, 1e-14  ;;  %v3059_v40 = vrot.slane %v3058_v12, 4 }
 0x22a   : > { %v3101_v46 = vsub.f32 2.0, %v3093_v3  ;;  %v3413_v19 = vpop.eup %3412 }
 0x22b   : > { %v3415_v34 = vpop.eup %3414  ;;  %v2827_v13 = vmul.f32 %v3413_v19, %v5099_v6 }
 0x22c   : > { %v3109_v59 = vmul.f32 %v3411_v32, %v3101_v46  ;;  %v2835_v30 = vmul.f32 %v3415_v34, %v5096_v7 }
 0x22d   : > { %v2843_v25 = vsub.f32 2.0, %v2827_v13 }
 0x22e   : > { %v5125_v31 = vmul.f32 %v3109_v59, %v3001_v8  ;;  %v2851_v41 = vsub.f32 2.0, %v2835_v30  ;;  %v2256_v8 = vadd.f32 %v2255_v38, %v5104_v47  ;;  %v3060_v59 = vadd.f32 %v3059_v40, %v3058_v12 }
 0x22f   : > { %v2859_v48 = vmul.f32 %v3413_v19, %v2843_v25  ;;  %v2290_v47 = vadd.f32 %v5106_v63, %v2252_v0  ;;  %v3129_v25 = vrot.slane %v5006_v45, 6 }
 0x230   : > { %v5130_v18 = vpop.f32.mrf.mxu0  ;;  %v2299_v10 = vpop.f32.mrf.mxu2  ;;  %v2867_v3 = vmul.f32 %v3415_v34, %v2851_v41  ;;  %v2295_v7 = vadd.f32 %v5119_v14, %v2256_v8  ;;  %v3061_v51 = vrot.slane %v3060_v59, 2 }
 0x231   : > { %v2259_v53 = vpop.f32.mrf.mxu1  ;;  %v5132_v36 = vpop.f32.mrf.mxu3  ;;  %v2891_v46 = vsel %vm2803_vm15, 0.0, %v2859_v48  ;;  %v2327_v60 = vadd.f32 %v5101_v49, %v2290_v47  ;;  %v3132_v49 = vrot.slane %v5125_v31, 3  ;;  %v3131_v48 = vrot.slane %v5084_v52, 4 }
 0x232   : > { %v2899_v22 = vsel %vm2803_vm15, 0.0, %v2867_v3  ;;  %v2907_v24 = vsel %vm2731_vm0, 1.0, %v2891_v46  ;;  %v2260_v39 = vadd.f32 %v2259_v53, %v5117_v58  ;;  %v2333_v19 = vadd.f32 %v5121_v43, %v2295_v7 }
 0x233   : > { %v2915_v27 = vsel %vm2739_vm1, 1.0, %v2899_v22  ;;  %v2935_v6 = vmul.f32 %v4626_v17, %v2907_v24  ;;  %v3062_v62 = vadd.f32 %v3061_v51, %v3060_v59  ;;  %v2372_v14 = vadd.f32 %v5130_v18, %v2327_v60 }
 0x234   : > { %v2943_v16 = vmul.f32 %v4624_v4, %v2915_v27  ;;  %v2300_v34 = vadd.f32 %v2299_v10, %v2260_v39  ;;  %v3130_v10 = vrot.slane %v5050_v29, 5  ;;  %v3142_v45 = vsel %vm3141_vm4, %v3131_v48, %v3132_v49 }
 0x235   : > { %v3063_v58 = vrot.slane %v3062_v62, 1 }
 0x236   : > { %v3065_v38 = vadd.f32 %v2943_v16, %v2935_v6  ;;  %v2339_v63 = vadd.f32 %v5132_v36, %v2300_v34 }
 0x237   : > { %v3064_v21 = vadd.f32 %v3063_v58, %v3062_v62 }
 0x238   : > { %v2375_v15 = vpop.f32.mrf.mxu0  ;;  %v2441_v42 = vpop.f32.mrf.mxu2  ;;  %v3066_v55 = vrot.slane %v3065_v38, 4 }
 0x239   : > { %v2404_v54 = vpop.f32.mrf.mxu1  ;;  %v2498_v9 = vpop.f32.mrf.mxu3  ;;  %v2376_v23 = vadd.f32 %v2375_v15, %v2333_v19 }
 0x23a   : > { %v2499_v44 = vadd.f32 %v2498_v9, %v2441_v42  ;;  %v2405_v43 = vadd.f32 %v2404_v54, %v2372_v14  ;;  %v3067_v9 = vadd.f32 %v3066_v55, %v3065_v38 }
 0x23c   : > { %v2950_v36 = vmul.f32 %v5150_v61, %v2405_v43 }
 0x240   : > { %v2379_v5 = vpop.f32.mrf.mxu0  ;;  %v2449_v32 = vpop.f32.mrf.mxu2 }
 0x241   : > { %v2408_v37 = vpop.f32.mrf.mxu1  ;;  %v2502_v50 = vpop.f32.mrf.mxu3  ;;  %v2380_v42 = vadd.f32 %v2379_v5, %v2339_v63  ;;  %v3068_v5 = vrot.slane %v3067_v9, 2 }
 0x242   : > { %v2409_v20 = vadd.f32 %v2408_v37, %v2376_v23  ;;  %v2503_v30 = vadd.f32 %v2502_v50, %v2449_v32  ;;  %v3138_v32 = vsel %vm3137_vm2, %v3129_v25, %v3130_v10 }
 0x243   : > { %v3069_v8 = vadd.f32 %v3068_v5, %v3067_v9 }
 0x244   : > { %v2958_v15 = vmul.f32 %v2942_v35, %v2409_v20  ;;  %v3140_v35 = vsel %vm3139_vm3, %v5141_v2, %v3138_v32 }
 0x245   : > { %v3070_v51 = vrot.slane %v3069_v8, 1 }
 0x246   : > { %v3002_v31 = vadd.f32 %v2958_v15, %v2950_v36 }
 0x248   : > { %v2536_v57 = vpop.f32.mrf.mxu0  ;;  %v2457_v11 = vpop.f32.mrf.mxu2  ;;  %v3003_v61 = vrot.slane %v3002_v31, 4 }
 0x249   : > { %v2412_v33 = vpop.f32.mrf.mxu1  ;;  %v2506_v26 = vpop.f32.mrf.mxu3  ;;  %v2537_v4 = vadd.f32 %v2536_v57, %v2499_v44 }
 0x24a   : > { %v2413_v41 = vadd.f32 %v2412_v33, %v2380_v42  ;;  %v2507_v22 = vadd.f32 %v2506_v26, %v2457_v11  ;;  %v3004_v39 = vadd.f32 %v3003_v61, %v3002_v31  ;;  %v3071_v26 = vadd.f32 %v3070_v51, %v3069_v8 }
 0x24c   : > { %v3078_v37 = vmul.f32 %v3064_v21, %v2413_v41  ;;  %v3005_v34 = vrot.slane %v3004_v39, 2 }
 0x24e   : > { %3416 = vrcp.f32 %v3078_v37 }
 0x250   : > { %v2618_v28 = vpop.f32.mrf.mxu2  ;;  %v2541_v53 = vpop.f32.mrf.mxu0 }
 0x251   : > { %v2573_v17 = vpop.f32.mrf.mxu1  ;;  %v2651_v1 = vpop.f32.mrf.mxu3  ;;  %v2542_v18 = vadd.f32 %v2541_v53, %v2503_v30 }
 0x252   : > { %v2574_v13 = vadd.f32 %v2573_v17, %v2537_v4 }
 0x254   : > { %v2619_v56 = vadd.f32 %v2618_v28, %v2574_v13  ;;  %v3417_v19 = vpop.eup %3416 }
 0x255   : > { %v3094_v28 = vmul.f32 %v3417_v19, %v3078_v37 }
 0x256   : > { %v2652_v50 = vadd.f32 %v2651_v1, %v2619_v56 }
 0x257   : > { %v3102_v60 = vsub.f32 2.0, %v3094_v28 }
 0x258   : > { %v2622_v12 = vpop.f32.mrf.mxu2  ;;  %v2546_v46 = vpop.f32.mrf.mxu0  ;;  %v2951_v59 = vmul.f32 %v2935_v6, %v2652_v50 }
 0x259   : > { %v2579_v54 = vpop.f32.mrf.mxu1  ;;  %v2655_v3 = vpop.f32.mrf.mxu3  ;;  %v2547_v24 = vadd.f32 %v2546_v46, %v2507_v22  ;;  %v3110_v4 = vmul.f32 %v3417_v19, %v3102_v60 }
 0x25a   : > { %v2580_v29 = vadd.f32 %v2579_v54, %v2542_v18 }
 0x25c   : > { %v2623_v40 = vadd.f32 %v2622_v12, %v2580_v29 }
 0x25e   : > { %v2656_v52 = vadd.f32 %v2655_v3, %v2623_v40 }
 0x260   : > { %v2959_v27 = vmul.f32 %v2943_v16, %v2656_v52  ;;  %v2626_v0 = vpop.f32.mrf.mxu2  ;;  %v3006_v16 = vadd.f32 %v3005_v34, %v3004_v39 }
 0x261   : > { %v2585_v57 = vpop.f32.mrf.mxu1  ;;  %v2659_v2 = vpop.f32.mrf.mxu3 }
 0x262   : > { %v3009_v33 = vadd.f32 %v2959_v27, %v2951_v59  ;;  %v2586_v7 = vadd.f32 %v2585_v57, %v2547_v24  ;;  %v3007_v17 = vrot.slane %v3006_v16, 1 }
 0x264   : > { %v3010_v47 = vrot.slane %v3009_v33, 4  ;;  %v2627_v38 = vadd.f32 %v2626_v0, %v2586_v7  ;;  %v3008_v20 = vadd.f32 %v3007_v17, %v3006_v16 }
 0x266   : > { %v3011_v62 = vadd.f32 %v3010_v47, %v3009_v33  ;;  %v2660_v11 = vadd.f32 %v2659_v2, %v2627_v38  ;;  %v3118_v53 = vmul.f32 %v3110_v4, %v3008_v20 }
 0x268   : > { %v3079_v44 = vmul.f32 %v3071_v26, %v2660_v11  ;;  %v3012_v6 = vrot.slane %v3011_v62, 2  ;;  %v3133_v10 = vrot.slane %v3118_v53, 2 }
 0x26a   : > { %3418 = vrcp.f32 %v3079_v44  ;;  %v3013_v23 = vadd.f32 %v3012_v6, %v3011_v62 }
 0x26c   : > { %v3014_v55 = vrot.slane %v3013_v23, 1 }
 0x26e   : > { %v3015_v63 = vadd.f32 %v3014_v55, %v3013_v23 }
 0x270   : > { %v3419_v1 = vpop.eup %3418 }
 0x271   : > { %v3095_v14 = vmul.f32 %v3419_v1, %v3079_v44 }
 0x273   : > { %v3103_v58 = vsub.f32 2.0, %v3095_v14 }
 0x275   : > { %v3111_v13 = vmul.f32 %v3419_v1, %v3103_v58 }
 0x277   : > { %v3119_v43 = vmul.f32 %v3111_v13, %v3015_v63 }
 0x279   : > { %v3134_v42 = vrot.slane %v3119_v43, 1 }
 0x27b   : > { %v3144_v30 = vsel %vm3143_vm5, %v3133_v10, %v3134_v42 }
 0x27c   : > { %v3146_v9 = vsel %vm3145_vm6, %v3142_v45, %v3144_v30 }
 0x27d   : > { %v3148_v49 = vsel %vm3147_vm7, %v3140_v35, %v3146_v9 }
 0x27e   : > { %3150 = vst [vmem:[%s235_s9] sm:$0xff] %v3148_v49 }
 0x27f   : > { %3478 = shalt.err (!%p3475_p8)
}
 0x280   : > { %3256 = dma.vmem_to_hbm [thread:$0]  (%p3591_p5), %s3165_s10, 128, %s3167_s11, %s3152_s12  }
 0x281 PF: > { %p3268_p9 = scmp.ge.s32.totalorder %s3517_s21, 2  ;;  %s3178_s23 = sand.u32 1, %s3505_s18  }
 0x282   : > { %s3179_s25 = scalar_lea.sflag [#allocation4], %s3178_s23 }
 0x283   : > { %p3263_p10 = pnand %p3268_p9, %p3595_p6 }
 0x285   : > { %p3264_p11 = pneg %p3263_p10 }
 0x287   : > { %3500 = dma.done.wait (%p3264_p11), %s3179_s25, 128  }
 0x288   : > { %3502 = vsyncadd (%p3264_p11), %s3179_s25, 4294967168  ;;  %p16_p12 = scmp.ge.s32.totalorder %s3578_s24, 4   ;;  %s5343_s18 = smov %s3509_s19 }
 0x289   : > { %s5344_s19 = smov %s3513_s20  ;;  %s5345_s20 = smov %s3589_s27 }
 0x28a   : > { %s5346_s21 = smov %s3578_s24  ;;  %18 = sbr.rel (!%p16_p12) target bundleno = 4 (0x4), region = 81 }
 0x28f   :  { %3185 = vsyncpa [#allocation3], 1 }
 0x290   :  { %3187 = vsyncpa [#allocation3 + $0x1], 1 }
 0x291   :  { %3188 = vsyncpa [#allocation4], 1 }
 0x292   :  { %3190 = vsyncpa [#allocation4 + $0x1], 1 }

</bundles_post_ra>
